<compile_context>
chip_gen: v7x
topology: tpu7x:2x2x1
jax: 0.10.0
libtpu: 0.0.40
codegen_flags: <defaults>
</compile_context>

<pallas_src>
import functools
import math

import jax
import jax.numpy as jnp
import numpy as np
from jax.experimental import pallas as pl
from jax.experimental.pallas import tpu as pltpu


def _round_up(x, m):
    return (x + m - 1) // m * m


def gnn_kernel(a_in_ref, a_out_ref, h_ref,
               w_ein_ref, b_ein_ref, w_eout_ref, b_eout_ref,
               b_iah_ref, b_oah_ref,
               w_ih_in_ref, w_ih_out_ref, b_ih_ref,
               w_hh_ref, b_hh_ref,
               out_ref, *, step, bt, n, hp, compute_dtype):
    f32 = jnp.float32
    m = bt * n

    # Per-tile adjacency (kept f32 -- tiny matmul, negligible FLOPs) and the
    # f32 master copy of the hidden state, flattened to (bt*n, hp).
    a_in = a_in_ref[...]                                   # (bt, n, n) f32
    a_out = a_out_ref[...]                                 # (bt, n, n) f32
    hidden = h_ref[...].astype(f32).reshape(m, hp)         # (m, hp) f32

    # Hoisted weight loads / casts (constant across GNN steps).
    w_ein = w_ein_ref[...].astype(compute_dtype)           # (hp, hp)
    w_eout = w_eout_ref[...].astype(compute_dtype)         # (hp, hp)
    w_ih_in = w_ih_in_ref[...].astype(compute_dtype)       # (hp, 3hp)
    w_ih_out = w_ih_out_ref[...].astype(compute_dtype)     # (hp, 3hp)
    w_hh = w_hh_ref[...].astype(compute_dtype)             # (hp, 3hp)

    # Hoisted bias broadcasts (JAX does not CSE broadcast_in_dim inside loops).
    b_ein = jnp.broadcast_to(b_ein_ref[...], (m, hp))
    b_eout = jnp.broadcast_to(b_eout_ref[...], (m, hp))
    b_iah = jnp.broadcast_to(b_iah_ref[...], (m, hp))
    b_oah = jnp.broadcast_to(b_oah_ref[...], (m, hp))
    b_ih = jnp.broadcast_to(b_ih_ref[...], (m, 3 * hp))
    b_hh = jnp.broadcast_to(b_hh_ref[...], (m, 3 * hp))

    def cell(h):
        hc = h.astype(compute_dtype)                       # MXU operand dtype
        # linear_edge_in / linear_edge_out, flattened over bt*n rows.
        eh_in = jnp.dot(hc, w_ein, preferred_element_type=f32) + b_ein     # (m, hp)
        eh_out = jnp.dot(hc, w_eout, preferred_element_type=f32) + b_eout  # (m, hp)
        # Adjacency aggregation (batched per graph, f32, tiny matmuls).
        agg_in = jnp.einsum('bij,bjh->bih', a_in, eh_in.reshape(bt, n, hp),
                            preferred_element_type=f32).reshape(m, hp)
        agg_out = jnp.einsum('bij,bjh->bih', a_out, eh_out.reshape(bt, n, hp),
                             preferred_element_type=f32).reshape(m, hp)
        inp_in = agg_in + b_iah
        inp_out = agg_out + b_oah
        # Gate projections. w_ih is pre-split into in/out halves, so the
        # original lane-axis concat becomes two MXU matmuls into one f32 sum.
        gi = (jnp.dot(inp_in.astype(compute_dtype), w_ih_in, preferred_element_type=f32)
              + jnp.dot(inp_out.astype(compute_dtype), w_ih_out, preferred_element_type=f32)
              + b_ih)                                                       # (m, 3hp)
        gh = jnp.dot(hc, w_hh, preferred_element_type=f32) + b_hh           # (m, 3hp)
        # hp is a multiple of 128 => these gate slices are lane-tile aligned.
        i_r, i_i, i_n = gi[:, :hp], gi[:, hp:2 * hp], gi[:, 2 * hp:]
        h_r, h_i, h_n = gh[:, :hp], gh[:, hp:2 * hp], gh[:, 2 * hp:]
        # Gating stays in f32 (VPU/EUP).
        resetgate = jax.nn.sigmoid(i_r + h_r)
        inputgate = jax.nn.sigmoid(i_i + h_i)
        newgate = jnp.tanh(i_n + resetgate * h_n)
        return newgate + inputgate * (h - newgate)

    if step == 1:
        hidden = cell(hidden)
    else:
        hidden = jax.lax.fori_loop(0, step, lambda _, h: cell(h), hidden,
                                   unroll=True)

    out_ref[...] = hidden.reshape(bt, n, hp).astype(out_ref.dtype)


def _prepare_params(params, H, Hp, compute_dtype):
    """Transpose / per-gate split / pad PyTorch-layout params for the kernel."""
    f32 = jnp.float32

    def pad_mat(x):                    # (h, h) -> (Hp, Hp)
        return jnp.pad(x, ((0, Hp - x.shape[0]), (0, Hp - x.shape[1])))

    def pad_vec(x):                    # (h,) -> (1, Hp)
        x = x.reshape(1, -1)
        return jnp.pad(x, ((0, 0), (0, Hp - x.shape[-1])))

    w_ih = params["w_ih"]              # (3H, 2H), torch Linear layout
    w_hh = params["w_hh"]              # (3H, H)

    # Per-gate blocks, each padded to (Hp, Hp) so gate g lives at lanes
    # [g*Hp, (g+1)*Hp) -- 128-aligned slicing inside the kernel.
    w_ih_in_t = jnp.concatenate(
        [pad_mat(w_ih[g * H:(g + 1) * H, :H].T) for g in range(3)], axis=1)
    w_ih_out_t = jnp.concatenate(
        [pad_mat(w_ih[g * H:(g + 1) * H, H:2 * H].T) for g in range(3)], axis=1)
    w_hh_t = jnp.concatenate(
        [pad_mat(w_hh[g * H:(g + 1) * H, :].T) for g in range(3)], axis=1)
    b_ih = jnp.concatenate(
        [pad_vec(params["b_ih"][g * H:(g + 1) * H]) for g in range(3)], axis=1)
    b_hh = jnp.concatenate(
        [pad_vec(params["b_hh"][g * H:(g + 1) * H]) for g in range(3)], axis=1)

    return dict(
        w_ein_t=pad_mat(params["w_ein"].T).astype(compute_dtype),
        b_ein=pad_vec(params["b_ein"]).astype(f32),
        w_eout_t=pad_mat(params["w_eout"].T).astype(compute_dtype),
        b_eout=pad_vec(params["b_eout"]).astype(f32),
        b_iah=pad_vec(params["b_iah"]).astype(f32),
        b_oah=pad_vec(params["b_oah"]).astype(f32),
        w_ih_in_t=w_ih_in_t.astype(compute_dtype),
        w_ih_out_t=w_ih_out_t.astype(compute_dtype),
        b_ih=b_ih.astype(f32),
        w_hh_t=w_hh_t.astype(compute_dtype),
        b_hh=b_hh.astype(f32),
    )


def gnn_forward(A, hidden, params, step=1, b_tile=None,
                compute_dtype=jnp.float32):
    """A: (B, N, 2N) [in-adj | out-adj]; hidden: (B, N, H); params: torch layout."""
    B, N, H = hidden.shape
    assert A.shape == (B, N, 2 * N)

    Hp = _round_up(H, 128)             # lane-dense feature dim
    Np = _round_up(N, 8)               # sublane-aligned node dim
    if b_tile is None:
        b_tile = min(B, 8)
    Bp = _round_up(B, b_tile)
    f32 = jnp.float32

    def pad3(x, d1, d2):
        return jnp.pad(x, ((0, Bp - B), (0, d1 - x.shape[1]), (0, d2 - x.shape[2])))

    # Split A on the host side so the kernel never slices an unaligned lane dim.
    a_in = pad3(A[:, :, :N].astype(f32), Np, Np)
    a_out = pad3(A[:, :, N:2 * N].astype(f32), Np, Np)
    h_pad = pad3(hidden.astype(f32), Np, Hp)

    kp = _prepare_params(params, H, Hp, compute_dtype)

    def const_spec(shape):
        nd = len(shape)
        return pl.BlockSpec(shape, lambda b: (0,) * nd)
    # Note: these constant operands could be single-buffered (pl.Buffered(1))
    # to free VMEM on v7x; default double-buffering is kept for portability.

    kernel = functools.partial(gnn_kernel, step=step, bt=b_tile, n=Np, hp=Hp,
                               compute_dtype=compute_dtype)

    out = pl.pallas_call(
        kernel,
        out_shape=jax.ShapeDtypeStruct((Bp, Np, Hp), hidden.dtype),
        grid=(Bp // b_tile,),
        in_specs=[
            pl.BlockSpec((b_tile, Np, Np), lambda b: (b, 0, 0)),   # a_in
            pl.BlockSpec((b_tile, Np, Np), lambda b: (b, 0, 0)),   # a_out
            pl.BlockSpec((b_tile, Np, Hp), lambda b: (b, 0, 0)),   # hidden
            const_spec((Hp, Hp)), const_spec((1, Hp)),             # edge_in  W^T, b
            const_spec((Hp, Hp)), const_spec((1, Hp)),             # edge_out W^T, b
            const_spec((1, Hp)), const_spec((1, Hp)),              # b_iah, b_oah
            const_spec((Hp, 3 * Hp)), const_spec((Hp, 3 * Hp)),    # w_ih in/out halves
            const_spec((1, 3 * Hp)),                               # b_ih
            const_spec((Hp, 3 * Hp)), const_spec((1, 3 * Hp)),     # w_hh^T, b_hh
        ],
        out_specs=pl.BlockSpec((b_tile, Np, Hp), lambda b: (b, 0, 0)),
        compiler_params=pltpu.CompilerParams(dimension_semantics=("parallel",)),
    )(a_in, a_out, h_pad,
      kp["w_ein_t"], kp["b_ein"], kp["w_eout_t"], kp["b_eout"],
      kp["b_iah"], kp["b_oah"],
      kp["w_ih_in_t"], kp["w_ih_out_t"], kp["b_ih"],
      kp["w_hh_t"], kp["b_hh"])

    return out[:B, :N, :H]


def gnn_reference(A, hidden, params, step=1):
    """Plain-JAX reference mirroring the PyTorch GNNCell (torch-layout params)."""
    B, N, H = hidden.shape
    for _ in range(step):
        eh_in = hidden @ params["w_ein"].T + params["b_ein"]
        eh_out = hidden @ params["w_eout"].T + params["b_eout"]
        input_in = jnp.matmul(A[:, :, :N], eh_in) + params["b_iah"]
        input_out = jnp.matmul(A[:, :, N:2 * N], eh_out) + params["b_oah"]
        inputs = jnp.concatenate([input_in, input_out], axis=2)
        gi = inputs @ params["w_ih"].T + params["b_ih"]
        gh = hidden @ params["w_hh"].T + params["b_hh"]
        i_r, i_i, i_n = jnp.split(gi, 3, axis=2)
        h_r, h_i, h_n = jnp.split(gh, 3, axis=2)
        resetgate = jax.nn.sigmoid(i_r + h_r)
        inputgate = jax.nn.sigmoid(i_i + h_i)
        newgate = jnp.tanh(i_n + resetgate * h_n)
        hidden = newgate + inputgate * (hidden - newgate)
    return hidden


def init_params(key, hidden_size):
    """Deterministic init (uniform(-stdv, stdv), stdv = 1/sqrt(H)), torch layout."""
    H = hidden_size
    stdv = 1.0 / math.sqrt(H)
    keys = jax.random.split(key, 10)

    def u(k, shape):
        return jax.random.uniform(k, shape, jnp.float32, -stdv, stdv)

    return {
        "w_ih": u(keys[0], (3 * H, 2 * H)),
        "w_hh": u(keys[1], (3 * H, H)),
        "b_ih": u(keys[2], (3 * H,)),
        "b_hh": u(keys[3], (3 * H,)),
        "b_iah": u(keys[4], (H,)),
        "b_oah": u(keys[5], (H,)),
        "w_ein": u(keys[6], (H, H)),     # linear_edge_in.weight (out, in)
        "b_ein": u(keys[7], (H,)),
        "w_eout": u(keys[8], (H, H)),    # linear_edge_out.weight
        "b_eout": u(keys[9], (H,)),
    }
    # TODO(synk): linear_edge_f is declared in the PyTorch __init__ but unused in forward; omitted.


if __name__ == "__main__":
    B, N, H = 4, 8, 32

    root = jax.random.PRNGKey(0)
    k_a, k_h, k_p = jax.random.split(root, 3)

    # Adjacency-like input (SR-GNN uses normalized in/out adjacency in [0, 1]).
    A = jax.random.uniform(k_a, (B, N, 2 * N), jnp.float32)
    hidden = jax.random.normal(k_h, (B, N, H), jnp.float32)
    params = init_params(k_p, H)

    # step=1 (SR-GNN default), f32 MXU operands.
    out = jax.block_until_ready(gnn_forward(A, hidden, params, step=1, b_tile=2))
    ref = gnn_reference(A, hidden, params, step=1)
    np.testing.assert_allclose(np.asarray(out), np.asarray(ref), rtol=1e-4, atol=1e-4)

    # step=3 exercises the in-kernel fori_loop path.
    out3 = jax.block_until_ready(gnn_forward(A, hidden, params, step=3, b_tile=2))
    ref3 = gnn_reference(A, hidden, params, step=3)
    np.testing.assert_allclose(np.asarray(out3), np.asarray(ref3), rtol=1e-3, atol=1e-3)

    # bf16 MXU-operand path (v6e/v7x): f32 accumulation + f32 gating.
    out_bf = jax.block_until_ready(
        gnn_forward(A, hidden, params, step=1, b_tile=2, compute_dtype=jnp.bfloat16))
    np.testing.assert_allclose(np.asarray(out_bf), np.asarray(ref), rtol=0.1, atol=0.1)

    print("KERNEL_OK")
</pallas_src>

<mosaic_0001>
module attributes {stable_mosaic.version = 11 : i64} {
  func.func @gnn_kernel(%arg0: i32, %arg1: memref<2x8x8xf32, #tpu.memory_space<vmem>>, %arg2: memref<2x8x8xf32, #tpu.memory_space<vmem>>, %arg3: memref<2x8x128xf32, #tpu.memory_space<vmem>>, %arg4: memref<128x128xf32, #tpu.memory_space<vmem>>, %arg5: memref<1x128xf32, #tpu.memory_space<vmem>>, %arg6: memref<128x128xf32, #tpu.memory_space<vmem>>, %arg7: memref<1x128xf32, #tpu.memory_space<vmem>>, %arg8: memref<1x128xf32, #tpu.memory_space<vmem>>, %arg9: memref<1x128xf32, #tpu.memory_space<vmem>>, %arg10: memref<128x384xf32, #tpu.memory_space<vmem>>, %arg11: memref<128x384xf32, #tpu.memory_space<vmem>>, %arg12: memref<1x384xf32, #tpu.memory_space<vmem>>, %arg13: memref<128x384xf32, #tpu.memory_space<vmem>>, %arg14: memref<1x384xf32, #tpu.memory_space<vmem>>, %arg15: memref<2x8x128xf32, #tpu.memory_space<vmem>>) attributes {dimension_semantics = [#tpu.dimension_semantics<parallel>], iteration_bounds = array<i64: 2>, scalar_prefetch = 0 : i64, scratch_operands = 0 : i64, tpu.core_type = #tpu.core_type<tc>, window_params = [{transform_indices = @transform_0, window_bounds = array<i64: 2, 8, 8>}, {transform_indices = @transform_1, window_bounds = array<i64: 2, 8, 8>}, {transform_indices = @transform_2, window_bounds = array<i64: 2, 8, 128>}, {pipeline_mode = #tpu.pipeline_mode<synchronous>, transform_indices = @transform_3, window_bounds = array<i64: 128, 128>}, {pipeline_mode = #tpu.pipeline_mode<synchronous>, transform_indices = @transform_4, window_bounds = array<i64: 1, 128>}, {pipeline_mode = #tpu.pipeline_mode<synchronous>, transform_indices = @transform_5, window_bounds = array<i64: 128, 128>}, {pipeline_mode = #tpu.pipeline_mode<synchronous>, transform_indices = @transform_6, window_bounds = array<i64: 1, 128>}, {pipeline_mode = #tpu.pipeline_mode<synchronous>, transform_indices = @transform_7, window_bounds = array<i64: 1, 128>}, {pipeline_mode = #tpu.pipeline_mode<synchronous>, transform_indices = @transform_8, window_bounds = array<i64: 1, 128>}, {pipeline_mode = #tpu.pipeline_mode<synchronous>, transform_indices = @transform_9, window_bounds = array<i64: 128, 384>}, {pipeline_mode = #tpu.pipeline_mode<synchronous>, transform_indices = @transform_10, window_bounds = array<i64: 128, 384>}, {pipeline_mode = #tpu.pipeline_mode<synchronous>, transform_indices = @transform_11, window_bounds = array<i64: 1, 384>}, {pipeline_mode = #tpu.pipeline_mode<synchronous>, transform_indices = @transform_12, window_bounds = array<i64: 128, 384>}, {pipeline_mode = #tpu.pipeline_mode<synchronous>, transform_indices = @transform_13, window_bounds = array<i64: 1, 384>}, {transform_indices = @transform_14, window_bounds = array<i64: 2, 8, 128>}]} {
    %c0 = arith.constant 0 : index
    %c0_0 = arith.constant 0 : index
    %c0_1 = arith.constant 0 : index
    %0 = vector.load %arg1[%c0, %c0_0, %c0_1] : memref<2x8x8xf32, #tpu.memory_space<vmem>>, vector<2x8x8xf32>
    %c0_2 = arith.constant 0 : index
    %c0_3 = arith.constant 0 : index
    %c0_4 = arith.constant 0 : index
    %1 = vector.load %arg2[%c0_2, %c0_3, %c0_4] : memref<2x8x8xf32, #tpu.memory_space<vmem>>, vector<2x8x8xf32>
    %c0_5 = arith.constant 0 : index
    %c0_6 = arith.constant 0 : index
    %c0_7 = arith.constant 0 : index
    %2 = vector.load %arg3[%c0_5, %c0_6, %c0_7] : memref<2x8x128xf32, #tpu.memory_space<vmem>>, vector<2x8x128xf32>
    %3 = vector.shape_cast %2 : vector<2x8x128xf32> to vector<16x128xf32>
    %c0_8 = arith.constant 0 : index
    %c0_9 = arith.constant 0 : index
    %4 = vector.load %arg4[%c0_8, %c0_9] : memref<128x128xf32, #tpu.memory_space<vmem>>, vector<128x128xf32>
    %c0_10 = arith.constant 0 : index
    %c0_11 = arith.constant 0 : index
    %5 = vector.load %arg6[%c0_10, %c0_11] : memref<128x128xf32, #tpu.memory_space<vmem>>, vector<128x128xf32>
    %c0_12 = arith.constant 0 : index
    %c0_13 = arith.constant 0 : index
    %6 = vector.load %arg10[%c0_12, %c0_13] : memref<128x384xf32, #tpu.memory_space<vmem>>, vector<128x384xf32>
    %c0_14 = arith.constant 0 : index
    %c0_15 = arith.constant 0 : index
    %7 = vector.load %arg11[%c0_14, %c0_15] : memref<128x384xf32, #tpu.memory_space<vmem>>, vector<128x384xf32>
    %c0_16 = arith.constant 0 : index
    %c0_17 = arith.constant 0 : index
    %8 = vector.load %arg13[%c0_16, %c0_17] : memref<128x384xf32, #tpu.memory_space<vmem>>, vector<128x384xf32>
    %c0_18 = arith.constant 0 : index
    %c0_19 = arith.constant 0 : index
    %9 = vector.load %arg5[%c0_18, %c0_19] : memref<1x128xf32, #tpu.memory_space<vmem>>, vector<1x128xf32>
    %10 = vector.shape_cast %9 : vector<1x128xf32> to vector<1x128xf32>
    %11 = vector.broadcast %10 : vector<1x128xf32> to vector<16x128xf32>
    %c0_20 = arith.constant 0 : index
    %c0_21 = arith.constant 0 : index
    %12 = vector.load %arg7[%c0_20, %c0_21] : memref<1x128xf32, #tpu.memory_space<vmem>>, vector<1x128xf32>
    %13 = vector.shape_cast %12 : vector<1x128xf32> to vector<1x128xf32>
    %14 = vector.broadcast %13 : vector<1x128xf32> to vector<16x128xf32>
    %c0_22 = arith.constant 0 : index
    %c0_23 = arith.constant 0 : index
    %15 = vector.load %arg8[%c0_22, %c0_23] : memref<1x128xf32, #tpu.memory_space<vmem>>, vector<1x128xf32>
    %16 = vector.shape_cast %15 : vector<1x128xf32> to vector<1x128xf32>
    %17 = vector.broadcast %16 : vector<1x128xf32> to vector<16x128xf32>
    %c0_24 = arith.constant 0 : index
    %c0_25 = arith.constant 0 : index
    %18 = vector.load %arg9[%c0_24, %c0_25] : memref<1x128xf32, #tpu.memory_space<vmem>>, vector<1x128xf32>
    %19 = vector.shape_cast %18 : vector<1x128xf32> to vector<1x128xf32>
    %20 = vector.broadcast %19 : vector<1x128xf32> to vector<16x128xf32>
    %c0_26 = arith.constant 0 : index
    %c0_27 = arith.constant 0 : index
    %21 = vector.load %arg12[%c0_26, %c0_27] : memref<1x384xf32, #tpu.memory_space<vmem>>, vector<1x384xf32>
    %22 = vector.shape_cast %21 : vector<1x384xf32> to vector<1x384xf32>
    %23 = vector.broadcast %22 : vector<1x384xf32> to vector<16x384xf32>
    %c0_28 = arith.constant 0 : index
    %c0_29 = arith.constant 0 : index
    %24 = vector.load %arg14[%c0_28, %c0_29] : memref<1x384xf32, #tpu.memory_space<vmem>>, vector<1x384xf32>
    %25 = vector.shape_cast %24 : vector<1x384xf32> to vector<1x384xf32>
    %26 = vector.broadcast %25 : vector<1x384xf32> to vector<16x384xf32>
    %cst = arith.constant dense<0.000000e+00> : vector<16x128xf32>
    %27 = tpu.matmul %3, %4, %cst {dimension_numbers = #tpu.dot_dimension_numbers<[1], [0], [0], [1], [0, 0, 1, 1], [], []>} : vector<16x128xf32>, vector<128x128xf32>, vector<16x128xf32> -> vector<16x128xf32>
    %28 = arith.addf %27, %11 : vector<16x128xf32>
    %cst_30 = arith.constant dense<0.000000e+00> : vector<16x128xf32>
    %29 = tpu.matmul %3, %5, %cst_30 {dimension_numbers = #tpu.dot_dimension_numbers<[1], [0], [0], [1], [0, 0, 1, 1], [], []>} : vector<16x128xf32>, vector<128x128xf32>, vector<16x128xf32> -> vector<16x128xf32>
    %30 = arith.addf %29, %14 : vector<16x128xf32>
    %31 = vector.shape_cast %28 : vector<16x128xf32> to vector<2x8x128xf32>
    "tpu.trace_start"() <{level = 10 : i32, message = "bij,bjh->bih"}> : () -> ()
    %cst_31 = arith.constant dense<0.000000e+00> : vector<2x8x128xf32>
    %32 = tpu.matmul %0, %31, %cst_31 {dimension_numbers = #tpu.dot_dimension_numbers<[2], [1], [1], [2], [0, 0, 0, 1, 1, 2], [0], [0]>} : vector<2x8x8xf32>, vector<2x8x128xf32>, vector<2x8x128xf32> -> vector<2x8x128xf32>
    "tpu.trace_stop"() : () -> ()
    %33 = vector.shape_cast %32 : vector<2x8x128xf32> to vector<16x128xf32>
    %34 = vector.shape_cast %30 : vector<16x128xf32> to vector<2x8x128xf32>
    "tpu.trace_start"() <{level = 10 : i32, message = "bij,bjh->bih"}> : () -> ()
    %cst_32 = arith.constant dense<0.000000e+00> : vector<2x8x128xf32>
    %35 = tpu.matmul %1, %34, %cst_32 {dimension_numbers = #tpu.dot_dimension_numbers<[2], [1], [1], [2], [0, 0, 0, 1, 1, 2], [0], [0]>} : vector<2x8x8xf32>, vector<2x8x128xf32>, vector<2x8x128xf32> -> vector<2x8x128xf32>
    "tpu.trace_stop"() : () -> ()
    %36 = vector.shape_cast %35 : vector<2x8x128xf32> to vector<16x128xf32>
    %37 = arith.addf %33, %17 : vector<16x128xf32>
    %38 = arith.addf %36, %20 : vector<16x128xf32>
    %cst_33 = arith.constant dense<0.000000e+00> : vector<16x384xf32>
    %39 = tpu.matmul %37, %6, %cst_33 {dimension_numbers = #tpu.dot_dimension_numbers<[1], [0], [0], [1], [0, 0, 1, 1], [], []>} : vector<16x128xf32>, vector<128x384xf32>, vector<16x384xf32> -> vector<16x384xf32>
    %cst_34 = arith.constant dense<0.000000e+00> : vector<16x384xf32>
    %40 = tpu.matmul %38, %7, %cst_34 {dimension_numbers = #tpu.dot_dimension_numbers<[1], [0], [0], [1], [0, 0, 1, 1], [], []>} : vector<16x128xf32>, vector<128x384xf32>, vector<16x384xf32> -> vector<16x384xf32>
    %41 = arith.addf %39, %40 : vector<16x384xf32>
    %42 = arith.addf %41, %23 : vector<16x384xf32>
    %cst_35 = arith.constant dense<0.000000e+00> : vector<16x384xf32>
    %43 = tpu.matmul %3, %8, %cst_35 {dimension_numbers = #tpu.dot_dimension_numbers<[1], [0], [0], [1], [0, 0, 1, 1], [], []>} : vector<16x128xf32>, vector<128x384xf32>, vector<16x384xf32> -> vector<16x384xf32>
    %44 = arith.addf %43, %26 : vector<16x384xf32>
    %45 = vector.extract_strided_slice %42 {offsets = [0, 0], sizes = [16, 128], strides = [1, 1]} : vector<16x384xf32> to vector<16x128xf32>
    %46 = vector.extract_strided_slice %42 {offsets = [0, 128], sizes = [16, 128], strides = [1, 1]} : vector<16x384xf32> to vector<16x128xf32>
    %47 = vector.extract_strided_slice %42 {offsets = [0, 256], sizes = [16, 128], strides = [1, 1]} : vector<16x384xf32> to vector<16x128xf32>
    %48 = vector.extract_strided_slice %44 {offsets = [0, 0], sizes = [16, 128], strides = [1, 1]} : vector<16x384xf32> to vector<16x128xf32>
    %49 = vector.extract_strided_slice %44 {offsets = [0, 128], sizes = [16, 128], strides = [1, 1]} : vector<16x384xf32> to vector<16x128xf32>
    %50 = vector.extract_strided_slice %44 {offsets = [0, 256], sizes = [16, 128], strides = [1, 1]} : vector<16x384xf32> to vector<16x128xf32>
    %51 = arith.addf %45, %48 : vector<16x128xf32>
    %52 = arith.negf %51 : vector<16x128xf32>
    %53 = math.exp %52 : vector<16x128xf32>
    %cst_36 = arith.constant 1.000000e+00 : f32
    %54 = vector.broadcast %cst_36 : f32 to vector<16x128xf32>
    %55 = arith.addf %54, %53 : vector<16x128xf32>
    %56 = arith.divf %54, %55 : vector<16x128xf32>
    %57 = arith.addf %46, %49 : vector<16x128xf32>
    %58 = arith.negf %57 : vector<16x128xf32>
    %59 = math.exp %58 : vector<16x128xf32>
    %cst_37 = arith.constant 1.000000e+00 : f32
    %60 = vector.broadcast %cst_37 : f32 to vector<16x128xf32>
    %61 = arith.addf %60, %59 : vector<16x128xf32>
    %62 = arith.divf %60, %61 : vector<16x128xf32>
    %63 = arith.mulf %56, %50 : vector<16x128xf32>
    %64 = arith.addf %47, %63 : vector<16x128xf32>
    %65 = math.tanh %64 : vector<16x128xf32>
    %66 = arith.subf %3, %65 : vector<16x128xf32>
    %67 = arith.mulf %62, %66 : vector<16x128xf32>
    %68 = arith.addf %65, %67 : vector<16x128xf32>
    %69 = vector.shape_cast %68 : vector<16x128xf32> to vector<2x8x128xf32>
    %c0_38 = arith.constant 0 : index
    %c0_39 = arith.constant 0 : index
    %c0_40 = arith.constant 0 : index
    %70 = vector.load %arg15[%c0_38, %c0_39, %c0_40] : memref<2x8x128xf32, #tpu.memory_space<vmem>>, vector<2x8x128xf32>
    tpu.vector_store %arg15[%c0_38, %c0_39, %c0_40], %69 {strides = array<i32>} : memref<2x8x128xf32, #tpu.memory_space<vmem>>, vector<2x8x128xf32>,
    return
  }
  func.func @transform_0(%arg0: i32) -> (i32, i32, i32) {
    %c0_i32 = arith.constant 0 : i32
    %c0_i32_0 = arith.constant 0 : i32
    %c0_i32_1 = arith.constant 0 : i32
    return %arg0, %c0_i32, %c0_i32_0 : i32, i32, i32
  }
  func.func @transform_1(%arg0: i32) -> (i32, i32, i32) {
    %c0_i32 = arith.constant 0 : i32
    %c0_i32_0 = arith.constant 0 : i32
    %c0_i32_1 = arith.constant 0 : i32
    return %arg0, %c0_i32, %c0_i32_0 : i32, i32, i32
  }
  func.func @transform_2(%arg0: i32) -> (i32, i32, i32) {
    %c0_i32 = arith.constant 0 : i32
    %c0_i32_0 = arith.constant 0 : i32
    %c0_i32_1 = arith.constant 0 : i32
    return %arg0, %c0_i32, %c0_i32_0 : i32, i32, i32
  }
  func.func @transform_3(%arg0: i32) -> (i32, i32) {
    %c0_i32 = arith.constant 0 : i32
    %c0_i32_0 = arith.constant 0 : i32
    %c0_i32_1 = arith.constant 0 : i32
    return %c0_i32, %c0_i32_0 : i32, i32
  }
  func.func @transform_4(%arg0: i32) -> (i32, i32) {
    %c0_i32 = arith.constant 0 : i32
    %c0_i32_0 = arith.constant 0 : i32
    %c0_i32_1 = arith.constant 0 : i32
    return %c0_i32, %c0_i32_0 : i32, i32
  }
  func.func @transform_5(%arg0: i32) -> (i32, i32) {
    %c0_i32 = arith.constant 0 : i32
    %c0_i32_0 = arith.constant 0 : i32
    %c0_i32_1 = arith.constant 0 : i32
    return %c0_i32, %c0_i32_0 : i32, i32
  }
  func.func @transform_6(%arg0: i32) -> (i32, i32) {
    %c0_i32 = arith.constant 0 : i32
    %c0_i32_0 = arith.constant 0 : i32
    %c0_i32_1 = arith.constant 0 : i32
    return %c0_i32, %c0_i32_0 : i32, i32
  }
  func.func @transform_7(%arg0: i32) -> (i32, i32) {
    %c0_i32 = arith.constant 0 : i32
    %c0_i32_0 = arith.constant 0 : i32
    %c0_i32_1 = arith.constant 0 : i32
    return %c0_i32, %c0_i32_0 : i32, i32
  }
  func.func @transform_8(%arg0: i32) -> (i32, i32) {
    %c0_i32 = arith.constant 0 : i32
    %c0_i32_0 = arith.constant 0 : i32
    %c0_i32_1 = arith.constant 0 : i32
    return %c0_i32, %c0_i32_0 : i32, i32
  }
  func.func @transform_9(%arg0: i32) -> (i32, i32) {
    %c0_i32 = arith.constant 0 : i32
    %c0_i32_0 = arith.constant 0 : i32
    %c0_i32_1 = arith.constant 0 : i32
    return %c0_i32, %c0_i32_0 : i32, i32
  }
  func.func @transform_10(%arg0: i32) -> (i32, i32) {
    %c0_i32 = arith.constant 0 : i32
    %c0_i32_0 = arith.constant 0 : i32
    %c0_i32_1 = arith.constant 0 : i32
    return %c0_i32, %c0_i32_0 : i32, i32
  }
  func.func @transform_11(%arg0: i32) -> (i32, i32) {
    %c0_i32 = arith.constant 0 : i32
    %c0_i32_0 = arith.constant 0 : i32
    %c0_i32_1 = arith.constant 0 : i32
    return %c0_i32, %c0_i32_0 : i32, i32
  }
  func.func @transform_12(%arg0: i32) -> (i32, i32) {
    %c0_i32 = arith.constant 0 : i32
    %c0_i32_0 = arith.constant 0 : i32
    %c0_i32_1 = arith.constant 0 : i32
    return %c0_i32, %c0_i32_0 : i32, i32
  }
  func.func @transform_13(%arg0: i32) -> (i32, i32) {
    %c0_i32 = arith.constant 0 : i32
    %c0_i32_0 = arith.constant 0 : i32
    %c0_i32_1 = arith.constant 0 : i32
    return %c0_i32, %c0_i32_0 : i32, i32
  }
  func.func @transform_14(%arg0: i32) -> (i32, i32, i32) {
    %c0_i32 = arith.constant 0 : i32
    %c0_i32_0 = arith.constant 0 : i32
    %c0_i32_1 = arith.constant 0 : i32
    return %arg0, %c0_i32, %c0_i32_0 : i32, i32, i32
  }
}

</mosaic_0001>

<bundles_post_ra>
// kernel: tpu_custom_call.1
= control target key start
LH: loop header
LB: loop body
LE: loop exit
PB: predicated region body
PF: predicated region fallthrough
CT: control target
= control target key end

     0   :  { %s3657_s0 = inlined_call_operand.hbm [shape: f32[4,8,8], index: 0, kind: input, shape index: {}]   ;;  %s3658_s1 = inlined_call_operand.hbm [shape: f32[4,8,8], index: 1, kind: input, shape index: {}]   ;;  %s3659_s2 = inlined_call_operand.hbm [shape: f32[4,8,128], index: 2, kind: input, shape index: {}]   ;;  %s3660_s3 = inlined_call_operand.hbm [shape: f32[128,128], index: 3, kind: input, shape index: {}]   ;;  %s3661_s4 = inlined_call_operand.vmem [shape: f32[1,128], index: 4, kind: input, shape index: {}]   ;;  %s3662_s5 = inlined_call_operand.hbm [shape: f32[128,128], index: 5, kind: input, shape index: {}]   ;;  %s3663_s6 = inlined_call_operand.vmem [shape: f32[1,128], index: 6, kind: input, shape index: {}]   ;;  %s3664_s7 = inlined_call_operand.vmem [shape: f32[1,128], index: 7, kind: input, shape index: {}]   ;;  %s3665_s8 = inlined_call_operand.vmem [shape: f32[1,128], index: 8, kind: input, shape index: {}]   ;;  %s3666_s9 = inlined_call_operand.hbm [shape: f32[128,384], index: 9, kind: input, shape index: {}]   ;;  %s3667_s10 = inlined_call_operand.hbm [shape: f32[128,384], index: 10, kind: input, shape index: {}]   ;;  %s3668_s11 = inlined_call_operand.vmem [shape: f32[1,384], index: 11, kind: input, shape index: {}]   ;;  %s3669_s12 = inlined_call_operand.hbm [shape: f32[128,384], index: 12, kind: input, shape index: {}]   ;;  %s3670_s13 = inlined_call_operand.vmem [shape: f32[1,384], index: 13, kind: input, shape index: {}]   ;;  %s3671_s14 = inlined_call_operand.hbm [shape: f32[4,8,128], index: 14, kind: output, shape index: {}]  }
   0x1   :  { %3703 = sst [smem:[#allocation30_spill]] %s3658_s1 }
   0x2   :  { %3704 = sst [smem:[#allocation31_spill]] %s3660_s3 }
   0x3   :  { %3705 = sst [smem:[#allocation32_spill]] %s3661_s4 }
   0x4   :  { %3706 = sst [smem:[#allocation33_spill]] %s3663_s6 }
   0x5   :  { %3707 = sst [smem:[#allocation34_spill]] %s3664_s7 }
   0x6   :  { %3708 = sst [smem:[#allocation35_spill]] %s3665_s8 }
   0x7   :  { %3709 = sst [smem:[#allocation36_spill]] %s3666_s9 }
   0x8   :  { %3710 = sst [smem:[#allocation37_spill]] %s3668_s11 }
   0x9   :  { %3711 = sst [smem:[#allocation38_spill]] %s3670_s13 }
   0xa   :  { %3712 = sst [smem:[#allocation39_spill]] %s3671_s14 }
   0xb   :  { %19 = vsyncpa [#allocation3], 0 }
   0xc   :  { %21 = vsyncpa [#allocation3 + $0x1], 0 }
   0xd   :  { %22 = vsyncpa [#allocation6], 0 }
   0xe   :  { %24 = vsyncpa [#allocation6 + $0x1], 0 }
   0xf   :  { %25 = vsyncpa [#allocation9], 0 }
  0x10   :  { %26 = vsyncpa [#allocation12], 0 }
  0x11   :  { %27 = vsyncpa [#allocation15], 0 }
  0x12   :  { %28 = vsyncpa [#allocation4], 0 }
  0x13   :  { %30 = vsyncpa [#allocation4 + $0x1], 0  ;;  %s3169_s29 = smov 0   ;;  %s3171_s30 = smov 0  }
  0x14   :  { %s3173_s15 = smov 0   ;;  %s3175_s16 = smov 0  }
  0x15 LB: > { %3713 = sst [smem:[#allocation23_spill]] %s3063_s29  ;;  %s3077_s17 = smov [#allocation8]   ;;  %s3075_s16 = sphi %s3175_s16, %s3765_s16   ;;  %s3071_s15 = sphi %s3173_s15, %s3769_s15   ;;  %s3067_s30 = sphi %s3171_s30, %s3768_s30   ;;  %s3063_s29 = sphi %s3169_s29, %s3767_s29  }
  0x16   : > { %3714 = sst [smem:[#allocation24_spill]] %s3075_s16  ;;  %s388_s18 = sshll.u32 %s3077_s17, 4  ;;  %s3196_s18 = int_to_ptr.vmem [resolvable:$true] %s388_s18 }
  0x17   : > { %s3190_s19 = sadd.s32 4294967295, %s3075_s16   ;;  %p2014_p0 = scmp.ge.s32.totalorder %s3075_s16, 1 }
  0x18   : > { %3715 = sst [smem:[#allocation25_spill]] %s3190_s19  ;;  %p3673_p1 = scmp.eq.s32.totalorder %s3190_s19, 0 }
  0x19   : > { %p363_p2 = scmp.eq.s32.totalorder %s3190_s19, 1  ;;  %p376_p3 = scmp.lt.s32.totalorder %s3075_s16, 3 }
  0x1a   : > { %s3078_s21 = smov [#allocation11]   ;;  %s3718_s3 = sld [smem:[#allocation31_spill]] }
  0x1b   : > { %p3198_p4 = pnand %p2014_p0, %p376_p3  ;;  %s426_s22 = sshll.u32 %s3078_s21, 4  ;;  %s3205_s22 = int_to_ptr.vmem [resolvable:$true] %s426_s22 }
  0x1d   : > { %s3716_s20 = scalar_select %p3198_p4, 1, 0 }
  0x1e   : > { %p2656_p6 = pneg %p3198_p4 }
  0x20   : > { %p3209_p7 = pnand %p2656_p6, %p3673_p1  ;;  %s2763_s26 = scalar_lea.hbm %s3718_s3, 2048 }
  0x21   : > { %p2764_p8 = scmp.ne.s32.totalorder %s3718_s3, %s2763_s26  ;;  %p2770_p12 = scmp.lt.u32.totalorder %s2763_s26, %s3718_s3 }
  0x22   : > { %s3717_s23 = scalar_select %p3209_p7, 1, 0 }
  0x23   : > { %p3221_p9 = pneg %p3209_p7 }
  0x25   : > { %s3719_s17 = scalar_select %p3221_p9, 1, 0 }
  0x26   : > { %p2766_p10 = pnand %p3221_p9, %p2764_p8 }
  0x28   : > { %p2767_p11 = pneg %p2766_p10 }
  0x2a   : > { %p2772_p13 = pnand %p2770_p12, %p2767_p11 }
  0x2c   : > { %2775 = shalt.err (!%p2772_p13)
}
  0x2d   : > { %s2776_s24 = scalar_lea.vmem %s3196_s18, 2048  ;;  %p2784_p5 = scmp.lt.s32.totalorder %s3196_s18, %s3196_s18 }
  0x2e   : > { %p2777_p0 = scmp.ne.s32.totalorder %s3196_s18, %s2776_s24  ;;  %p2785_p1 = scmp.lt.s32.totalorder %s2776_s24, %s2776_s24 }
  0x30   : > { %p2779_p3 = pnand %p2777_p0, %p3221_p9  ;;  %p2786_p8 = por %p2785_p1, %p2784_p5 }
  0x32   : > { %p2780_p6 = pneg %p2779_p3 }
  0x34   : > { %p2787_p10 = pnand %p2786_p8, %p2780_p6 }
  0x36   : > { %2790 = shalt.err (!%p2787_p10)
}
  0x37   : > { %s3679_s25 = smov 128   ;;  %s3681_s14 = smov 8  }
  0x38   : > { %2659 = dma.hbm_to_vmem [thread:$0]  (!%p3209_p7), %s3718_s3, 2048, %s3196_s18, [#allocation9], %s3679_s25, %s3679_s25, %s3681_s14  }
  0x39   : > { %s3720_s9 = sld [smem:[#allocation36_spill]] }
  0x3f   : > { %s2791_s24 = scalar_lea.hbm %s3720_s9, 6144 }
  0x40   : > { %p2792_p1 = scmp.ne.s32.totalorder %s3720_s9, %s2791_s24  ;;  %p2798_p12 = scmp.lt.u32.totalorder %s2791_s24, %s3720_s9 }
  0x42   : > { %p2794_p5 = pnand %p2792_p1, %p3221_p9 }
  0x44   : > { %p2795_p11 = pneg %p2794_p5 }
  0x46   : > { %p2800_p13 = pnand %p2798_p12, %p2795_p11 }
  0x48   : > { %2803 = shalt.err (!%p2800_p13)
}
  0x49   : > { %s2804_s18 = scalar_lea.vmem %s3205_s22, 6144  ;;  %p2812_p8 = scmp.lt.s32.totalorder %s3205_s22, %s3205_s22 }
  0x4a   : > { %p2805_p0 = scmp.ne.s32.totalorder %s3205_s22, %s2804_s18  ;;  %p2813_p10 = scmp.lt.s32.totalorder %s2804_s18, %s2804_s18 }
  0x4c   : > { %p2807_p3 = pnand %p2805_p0, %p3221_p9  ;;  %p2814_p1 = por %p2813_p10, %p2812_p8 }
  0x4e   : > { %p2808_p6 = pneg %p2807_p3 }
  0x50   : > { %p2815_p5 = pnand %p2814_p1, %p2808_p6 }
  0x52   : > { %2818 = shalt.err (!%p2815_p5)
}
  0x53   : > { %s3675_s11 = smov 384   ;;  %s3677_s7 = smov 24  }
  0x54   : > { %2665 = dma.hbm_to_vmem [thread:$0]  (!%p3209_p7), %s3720_s9, 6144, %s3205_s22, [#allocation12], %s3675_s11, %s3675_s11, %s3677_s7  }
  0x55   : > { %s2013_s26 = sadd.s32 4294967294, %s3075_s16   ;;  %s3273_s27 = sadd.s32 1, %s3075_s16  }
  0x56   : > { %3721 = sst [smem:[#allocation26_spill]] %s3273_s27  ;;  %s43_s28 = sadd.s32 1, %s3071_s15 }
  0x57   : > { %s40_s21 = ssub.s32 %s3075_s16, %s3273_s27  ;;  %p50_p11 = scmp.ne.s32.totalorder %s3071_s15, %s3067_s30 }
  0x58   : > { %p41_p12 = scmp.eq.s32.totalorder %s40_s21, 0  ;;  %p51_p13 = scmp.eq.s32.totalorder %s3075_s16, 0 }
  0x59   : > { %p56_p0 = scmp.ne.s32.totalorder %s3067_s30, %s3063_s29  ;;  %p3285_p3 = por %p363_p2, %p50_p11 }
  0x5a   : > { %s3290_s18 = scalar_select %p41_p12, %s3071_s15, %s43_s28  }
  0x5b   : > { %s3722_s24 = scalar_select %p3285_p3, 1, 0 }
  0x5c   : > { %3724 = sst [smem:[#allocation28_spill]] %s3290_s18  ;;  %p52_p6 = por %p51_p13, %p50_p11 }
  0x5d   : > { %3723 = sst [smem:[#allocation27_spill]] %s3722_s24  ;;  %p3725_p8 = scmp.eq.s32.totalorder %s3190_s19, 0 }
  0x5e   : > { %p369_p1 = scmp.eq.s32.totalorder %s2013_s26, 1  ;;  %p2691_p5 = scmp.lt.s32.totalorder %s3075_s16, 2 }
  0x5f   : > { %p3294_p10 = por %p3725_p8, %p56_p0  ;;  %s3683_s8 = sand.u32 1, %s3071_s15  }
  0x60   : > { %s3301_s13 = sshll.u32 %s3075_s16, 8  ;;  %p3303_p4 = por %p369_p1, %p56_p0 }
  0x61   : > { %s3726_s22 = scalar_select %p3294_p10, 1, 0 }
  0x62   : > { %s3727_s21 = scalar_select %p3303_p4, 1, 0 }
  0x63   : > { %s3309_s11 = sshll.u32 %s3683_s8, 4  ;;  %p3311_p2 = pnand %p2691_p5, %p52_p6 }
  0x64   : > { %3728 = sst [smem:[#allocation29_spill]] %s3727_s21  ;;  %s493_s7 = sand.u32 1, %s3075_s16  }
  0x65   : > { %s3729_s28 = scalar_select %p3311_p2, 1, 0 }
  0x66   : > { %s3730_s1 = sld [smem:[#allocation30_spill]]  ;;  %s497_s3 = scalar_lea.vmem [#allocation5], %s3309_s11 }
  0x67   : > { %s504_s9 = sshll.u32 %s497_s3, 4  ;;  %s3083_s8 = smov [#allocation10]   ;;  %s3323_s9 = int_to_ptr.vmem [resolvable:$true] %s504_s9 }
  0x68   : > { %s3325_s18 = sshll.u32 %s3083_s8, 4  ;;  %s3327_s27 = scalar_lea.sflag [#allocation6], %s493_s7  ;;  %s405_s18 = int_to_ptr.vmem [resolvable:$true] %s3325_s18 }
  0x69   : > { %p3333_p12 = pneg %p3311_p2 }
  0x6b   : > { %s3731_s25 = scalar_select %p3333_p12, 1, 0 }
  0x6c   : > { %s3320_s14 = scalar_lea.hbm %s3730_s1, %s3301_s13  ;;  %s2824_s16 = scalar_lea.hbm %s3730_s1, 512 }
  0x6d   : > { %s2819_s21 = scalar_lea.hbm %s3320_s14, 256  ;;  %p2825_p6 = scmp.lt.u32.totalorder %s3320_s14, %s3730_s1 }
  0x6e   : > { %p2820_p11 = scmp.ne.s32.totalorder %s3320_s14, %s2819_s21  ;;  %p2826_p8 = scmp.lt.u32.totalorder %s2824_s16, %s2819_s21 }
  0x6f   : > { %p2828_p5 = scmp.lt.u32.totalorder %s2819_s21, %s3320_s14 }
  0x70   : > { %p2822_p13 = pnand %p3333_p12, %p2820_p11  ;;  %p2827_p1 = por %p2826_p8, %p2825_p6 }
  0x72   : > { %p2823_p0 = pneg %p2822_p13  ;;  %p2829_p4 = por %p2828_p5, %p2827_p1 }
  0x74   : > { %p2830_p3 = pnand %p2829_p4, %p2823_p0 }
  0x76   : > { %2833 = shalt.err (!%p2830_p3)
}
  0x77   : > { %s2834_s7 = scalar_lea.vmem %s3323_s9, 256  ;;  %s3084_s26 = smov [#allocation5]  }
  0x78   : > { %p2835_p11 = scmp.ne.s32.totalorder %s3323_s9, %s2834_s7  ;;  %s2839_s3 = sshll.u32 %s3084_s26, 4  ;;  %s2840_s3 = int_to_ptr.vmem [resolvable:$false] %s2839_s3 }
  0x79   : > { %s2841_s29 = scalar_lea.vmem %s2840_s3, 512  ;;  %p2842_p7 = scmp.lt.s32.totalorder %s3323_s9, %s2840_s3 }
  0x7a   : > { %p2837_p13 = pnand %p2835_p11, %p3333_p12  ;;  %p2843_p9 = scmp.lt.s32.totalorder %s2841_s29, %s2834_s7 }
  0x7c   : > { %p2838_p10 = pneg %p2837_p13  ;;  %p2844_p6 = por %p2843_p9, %p2842_p7 }
  0x7e   : > { %p2845_p8 = pnand %p2844_p6, %p2838_p10 }
  0x80   : > { %2848 = shalt.err (!%p2845_p8)
}
  0x81   : > { %s3732_s16 = smov 8   ;;  %s3733_s21 = smov 128  }
  0x82   : > { %2678 = dma.hbm_to_vmem [thread:$0]  (!%p3311_p2), %s3320_s14, 256, %s3323_s9, %s3327_s27, %s3733_s21, %s3733_s21, %s3732_s16  }
  0x83   : > { %s2849_s3 = scalar_lea.hbm %s3662_s5, 2048  ;;  %p3734_p7 = scmp.ne.s32.totalorder %s3719_s17, 0 }
  0x84   : > { %p2850_p4 = scmp.ne.s32.totalorder %s3662_s5, %s2849_s3  ;;  %p2856_p10 = scmp.lt.u32.totalorder %s2849_s3, %s3662_s5 }
  0x86   : > { %p2852_p9 = pnand %p2850_p4, %p3734_p7 }
  0x88   : > { %p2853_p3 = pneg %p2852_p9 }
  0x8a   : > { %p2858_p0 = pnand %p2856_p10, %p2853_p3 }
  0x8c   : > { %2861 = shalt.err (!%p2858_p0)
}
  0x8d   : > { %s2862_s6 = scalar_lea.vmem %s405_s18, 2048  ;;  %p2870_p13 = scmp.lt.s32.totalorder %s405_s18, %s405_s18 }
  0x8e   : > { %p2863_p1 = scmp.ne.s32.totalorder %s405_s18, %s2862_s6  ;;  %p2871_p6 = scmp.lt.s32.totalorder %s2862_s6, %s2862_s6 }
  0x90   : > { %p2865_p5 = pnand %p2863_p1, %p3734_p7  ;;  %p2872_p8 = por %p2871_p6, %p2870_p13 }
  0x92   : > { %p2866_p11 = pneg %p2865_p5 }
  0x94   : > { %p2873_p2 = pnand %p2872_p8, %p2866_p11 }
  0x96   : > { %2876 = shalt.err (!%p2873_p2)
}
  0x97   : > { %p3735_p4 = scmp.ne.s32.totalorder %s3717_s23, 0  ;;  %s3085_s14 = smov [#allocation13]  }
  0x98   : > { %s439_s24 = sshll.u32 %s3085_s14, 4  ;;  %s3086_s8 = smov [#allocation14]   ;;  %s440_s24 = int_to_ptr.vmem [resolvable:$true] %s439_s24 }
  0x99   : > { %2662 = dma.hbm_to_vmem [thread:$0]  (!%p3735_p4), %s3662_s5, 2048, %s405_s18, [#allocation9], %s3733_s21, %s3733_s21, %s3732_s16  }
  0x9a   : > { %s455_s26 = sshll.u32 %s3086_s8, 4  ;;  %s2877_s7 = scalar_lea.hbm %s3667_s10, 6144  ;;  %s456_s26 = int_to_ptr.vmem [resolvable:$true] %s455_s26 }
  0x9b   : > { %p2878_p2 = scmp.ne.s32.totalorder %s3667_s10, %s2877_s7  ;;  %p2884_p10 = scmp.lt.u32.totalorder %s2877_s7, %s3667_s10 }
  0x9d   : > { %p2880_p9 = pnand %p2878_p2, %p3734_p7 }
  0x9f   : > { %p2881_p3 = pneg %p2880_p9 }
  0xa1   : > { %p2886_p0 = pnand %p2884_p10, %p2881_p3 }
  0xa3   : > { %2889 = shalt.err (!%p2886_p0)
}
  0xa4   : > { %s2890_s18 = scalar_lea.vmem %s440_s24, 6144  ;;  %p2898_p13 = scmp.lt.s32.totalorder %s440_s24, %s440_s24 }
  0xa5   : > { %p2891_p1 = scmp.ne.s32.totalorder %s440_s24, %s2890_s18  ;;  %p2899_p6 = scmp.lt.s32.totalorder %s2890_s18, %s2890_s18 }
  0xa7   : > { %p2893_p5 = pnand %p2891_p1, %p3734_p7  ;;  %p2900_p8 = por %p2899_p6, %p2898_p13 }
  0xa9   : > { %p2894_p11 = pneg %p2893_p5 }
  0xab   : > { %p2901_p12 = pnand %p2900_p8, %p2894_p11 }
  0xad   : > { %2904 = shalt.err (!%p2901_p12)
}
  0xae   : > { %s3736_s4 = smov 24   ;;  %s3737_s9 = smov 384  }
  0xaf   : > { %2668 = dma.hbm_to_vmem [thread:$0]  (!%p3735_p4), %s3667_s10, 6144, %s440_s24, [#allocation12], %s3737_s9, %s3737_s9, %s3736_s4  }
  0xb0   : > { %s2905_s6 = scalar_lea.hbm %s3669_s12, 6144 }
  0xb1   : > { %p2906_p2 = scmp.ne.s32.totalorder %s3669_s12, %s2905_s6  ;;  %p2912_p3 = scmp.lt.u32.totalorder %s2905_s6, %s3669_s12 }
  0xb3   : > { %p2908_p12 = pnand %p2906_p2, %p3734_p7 }
  0xb5   : > { %p2909_p9 = pneg %p2908_p12 }
  0xb7   : > { %p2914_p10 = pnand %p2912_p3, %p2909_p9 }
  0xb9   : > { %2917 = shalt.err (!%p2914_p10)
}
  0xba   : > { %s2918_s19 = scalar_lea.vmem %s456_s26, 6144  ;;  %p2926_p11 = scmp.lt.s32.totalorder %s456_s26, %s456_s26 }
  0xbb   : > { %p2919_p0 = scmp.ne.s32.totalorder %s456_s26, %s2918_s19  ;;  %p2927_p13 = scmp.lt.s32.totalorder %s2918_s19, %s2918_s19 }
  0xbd   : > { %p2921_p1 = pnand %p2919_p0, %p3734_p7  ;;  %p2928_p6 = por %p2927_p13, %p2926_p11 }
  0xbf   : > { %p2922_p5 = pneg %p2921_p1 }
  0xc1   : > { %p2929_p8 = pnand %p2928_p6, %p2922_p5 }
  0xc3   : > { %2932 = shalt.err (!%p2929_p8)
}
  0xc4   : > { %2671 = dma.hbm_to_vmem [thread:$0]  (!%p3735_p4), %s3669_s12, 6144, %s456_s26, [#allocation15], %s3737_s9, %s3737_s9, %s3736_s4  }
  0xc5   : > { %s3428_s3 = scalar_lea.hbm %s3657_s0, %s3301_s13  ;;  %s476_s23 = scalar_lea.vmem [#allocation2], %s3309_s11 }
  0xc6   : > { %s483_s6 = sshll.u32 %s476_s23, 4  ;;  %s3437_s1 = scalar_lea.hbm %s3659_s2, %s3301_s13  ;;  %s3431_s6 = int_to_ptr.vmem [resolvable:$true] %s483_s6 }
  0xc7   : > { %s3738_s18 = sand.u32 1, %s3071_s15   ;;  %s2933_s4 = scalar_lea.hbm %s3428_s3, 256 }
  0xc8   : > { %s3441_s26 = scalar_lea.sflag [#allocation3], %s3738_s18  ;;  %p2934_p7 = scmp.ne.s32.totalorder %s3428_s3, %s2933_s4 }
  0xc9   : > { %p3739_p4 = scmp.ne.s32.totalorder %s3731_s25, 0  ;;  %s2938_s24 = scalar_lea.hbm %s3657_s0, 512 }
  0xca   : > { %p2939_p9 = scmp.lt.u32.totalorder %s3428_s3, %s3657_s0  ;;  %p2940_p3 = scmp.lt.u32.totalorder %s2938_s24, %s2933_s4 }
  0xcb   : > { %p2936_p2 = pnand %p2934_p7, %p3739_p4  ;;  %p2942_p0 = scmp.lt.u32.totalorder %s2933_s4, %s3428_s3 }
  0xcc   : > { %p2941_p10 = por %p2940_p3, %p2939_p9 }
  0xcd   : > { %p2937_p12 = pneg %p2936_p2 }
  0xce   : > { %p2943_p1 = por %p2942_p0, %p2941_p10 }
  0xd0   : > { %p2944_p5 = pnand %p2943_p1, %p2937_p12 }
  0xd2   : > { %2947 = shalt.err (!%p2944_p5)
}
  0xd3   : > { %s2948_s13 = scalar_lea.vmem %s3431_s6, 256  ;;  %s3087_s8 = smov [#allocation2]  }
  0xd4   : > { %p2949_p11 = scmp.ne.s32.totalorder %s3431_s6, %s2948_s13  ;;  %s2953_s23 = sshll.u32 %s3087_s8, 4  ;;  %s2954_s23 = int_to_ptr.vmem [resolvable:$false] %s2953_s23 }
  0xd5   : > { %s2955_s7 = scalar_lea.vmem %s2954_s23, 512  ;;  %p2956_p8 = scmp.lt.s32.totalorder %s3431_s6, %s2954_s23 }
  0xd6   : > { %p2951_p13 = pnand %p2949_p11, %p3739_p4  ;;  %p2957_p7 = scmp.lt.s32.totalorder %s2955_s7, %s2948_s13 }
  0xd8   : > { %p2952_p6 = pneg %p2951_p13  ;;  %p2958_p2 = por %p2957_p7, %p2956_p8 }
  0xda   : > { %p2959_p9 = pnand %p2958_p2, %p2952_p6 }
  0xdc   : > { %2962 = shalt.err (!%p2959_p9)
}
  0xdd   : > { %p3740_p12 = scmp.ne.s32.totalorder %s3729_s28, 0  ;;  %s518_s29 = scalar_lea.vmem [#allocation7], %s3309_s11 }
  0xde   : > { %s525_s18 = sshll.u32 %s518_s29, 4  ;;  %s2963_s4 = scalar_lea.hbm %s3437_s1, 256  ;;  %s3469_s18 = int_to_ptr.vmem [resolvable:$true] %s525_s18 }
  0xdf   : > { %2675 = dma.hbm_to_vmem [thread:$0]  (!%p3740_p12), %s3428_s3, 256, %s3431_s6, %s3441_s26, %s3733_s21, %s3733_s21, %s3732_s16  }
  0xe0   : > { %p2964_p3 = scmp.ne.s32.totalorder %s3437_s1, %s2963_s4  ;;  %s2968_s24 = scalar_lea.hbm %s3659_s2, 512 }
  0xe1   : > { %p2969_p1 = scmp.lt.u32.totalorder %s3437_s1, %s3659_s2  ;;  %p2970_p5 = scmp.lt.u32.totalorder %s2968_s24, %s2963_s4 }
  0xe2   : > { %p2966_p10 = pnand %p2964_p3, %p3739_p4  ;;  %p2972_p13 = scmp.lt.u32.totalorder %s2963_s4, %s3437_s1 }
  0xe3   : > { %p2971_p11 = por %p2970_p5, %p2969_p1 }
  0xe4   : > { %p2967_p0 = pneg %p2966_p10 }
  0xe5   : > { %p2973_p6 = por %p2972_p13, %p2971_p11 }
  0xe7   : > { %p2974_p8 = pnand %p2973_p6, %p2967_p0 }
  0xe9   : > { %2977 = shalt.err (!%p2974_p8)
}
  0xea   : > { %s2978_s11 = scalar_lea.vmem %s3469_s18, 256  ;;  %s3088_s3 = smov [#allocation7]  }
  0xeb   : > { %p2979_p7 = scmp.ne.s32.totalorder %s3469_s18, %s2978_s11  ;;  %s2983_s6 = sshll.u32 %s3088_s3, 4  ;;  %s2984_s6 = int_to_ptr.vmem [resolvable:$false] %s2983_s6 }
  0xec   : > { %s2985_s26 = scalar_lea.vmem %s2984_s6, 512  ;;  %p2986_p3 = scmp.lt.s32.totalorder %s3469_s18, %s2984_s6 }
  0xed   : > { %p2981_p2 = pnand %p2979_p7, %p3739_p4  ;;  %p2987_p10 = scmp.lt.s32.totalorder %s2985_s26, %s2978_s11 }
  0xef   : > { %p2982_p9 = pneg %p2981_p2  ;;  %p2988_p1 = por %p2987_p10, %p2986_p3 }
  0xf1   : > { %p2989_p5 = pnand %p2988_p1, %p2982_p9 }
  0xf3   : > { %2992 = shalt.err (!%p2989_p5)
}
  0xf4   : > { %2681 = dma.hbm_to_vmem [thread:$0]  (!%p3740_p12), %s3437_s1, 256, %s3469_s18, %s3327_s27, %s3733_s21, %s3733_s21, %s3732_s16  }
  0xf5   : > { %p3741_p4 = scmp.ne.s32.totalorder %s3716_s20, 0 }
  0xf6   : > { %s3499_s25 = sand.u32 (!%p3741_p4), 1, %s3067_s30   ;;  %p3742_p0 = scmp.ne.s32.totalorder (!%p3741_p4), %s3726_s22, 0 }
  0xf7   : > { %537 = sbr.rel (%p3741_p4) target bundleno = 1087 (0x43f), region = 76  ;;  %s3502_s13 = sshll.u32 (!%p3741_p4), %s3499_s25, 4 }
  0xf8   : > { %s540_s28 = scalar_lea.sflag (!%p3741_p4), [#allocation3], %s3499_s25  ;;  %s543_s8 = scalar_lea.vmem (!%p3741_p4), [#allocation2], %s3502_s13 }
  0xfe   : > { %3038 = dma.done.wait (%p3742_p0), %s540_s28, 256  }
  0xff   : > { %3040 = vsyncadd (%p3742_p0), %s540_s28, 4294967040  ;;  %s3743_s27 = sld [smem:[#allocation25_spill]]  ;;  %s552_s21 = scalar_lea.vmem [#allocation5], %s3502_s13 }
 0x105   : > { %s548_s20 = sand.u32 1, %s3743_s27  }
 0x106   : > { %s549_s16 = scalar_lea.sflag [#allocation6], %s548_s20 }
 0x107   : > { %3042 = dma.done.wait (%p3742_p0), %s549_s16, 512  }
 0x108   : > { %3044 = vsyncadd (%p3742_p0), %s549_s16, 4294966784  ;;  %s561_s1 = scalar_lea.vmem [#allocation7], %s3502_s13  ;;  %p3744_p12 = scmp.eq.s32.totalorder %s3743_s27, 0 }
 0x10a   : > { %3046 = dma.done.wait (%p3744_p12), [#allocation9], 4096   ;;  %p3745_p11 = pmov %p3744_p12 }
 0x10c   : > { %3048 = vsyncadd (%p3745_p11), [#allocation9], 4294963200  ;;  %p3746_p13 = pmov %p3745_p11 }
 0x10d   : > { %p3747_p6 = pmov %p3745_p11 }
 0x10e   : > { %3050 = dma.done.wait (%p3746_p13), [#allocation12], 12288  }
 0x10f   : > { %3052 = vsyncadd (%p3747_p6), [#allocation12], 4294955008  ;;  %p3748_p8 = pmov %p3747_p6 }
 0x110   : > { %p3749_p7 = pmov %p3747_p6 }
 0x111   : > { %3054 = dma.done.wait (%p3748_p8), [#allocation15], 6144  }
 0x112   : > { %3056 = vsyncadd (%p3749_p7), [#allocation15], 4294961152  ;;  %v646_v0 = vld [vmem:[#allocation8] sm:$0xff]  ;;  %v647_v1 = vld [vmem:[#allocation8 + $0x8] sm:$0xff]  ;;  %v3089_v50 = vmov 0.0   ;;  %vm3090_vm0 = vmmov 0  }
 0x113   : > { %v662_v2 = vld [vmem:[#allocation10] sm:$0xff]  ;;  %v2354_v3 = vpack.c.bf16 %v647_v1, %v646_v0  ;;  %v663_v4 = vld [vmem:[#allocation10 + $0x8] sm:$0xff]  ;;  %v648_v5 = vld [vmem:[#allocation8 + $0x10] sm:$0xff]  ;;  %s3750_s7 = sld [smem:[#allocation32_spill]]  ;;  %s3751_s4 = sld [smem:[#allocation33_spill]]  ;;  %vm1034_vm1 = vcmask 64512  }
 0x114   : > { %v649_v6 = vld [vmem:[#allocation8 + $0x18] sm:$0xff]  ;;  %v2386_v7 = vpack.c.bf16 %v663_v4, %v662_v2  ;;  %v664_v9 = vld [vmem:[#allocation10 + $0x10] sm:$0xff]  ;;  %v650_v11 = vld [vmem:[#allocation8 + $0x20] sm:$0xff]  ;;  %s3752_s24 = sld [smem:[#allocation35_spill]]  ;;  %s3753_s11 = sld [smem:[#allocation34_spill]] }
 0x115   : > { %v2358_v8 = vpack.c.bf16 %v649_v6, %v648_v5  ;;  %v665_v10 = vld [vmem:[#allocation10 + $0x18] sm:$0xff]  ;;  %2355 = vmatprep.subr.bf16.mxu0 %v2354_v3  ;;  %v651_v13 = vld [vmem:[#allocation8 + $0x28] sm:$0xff]  ;;  %v666_v14 = vld [vmem:[#allocation10 + $0x20] sm:$0xff]  ;;  %s3754_s26 = sld [smem:[#allocation38_spill]]  ;;  %s3755_s20 = sld [smem:[#allocation37_spill]] }
 0x116   : > { %v2390_v12 = vpack.c.bf16 %v665_v10, %v664_v9  ;;  %v667_v15 = vld [vmem:[#allocation10 + $0x28] sm:$0xff]  ;;  %2357 = vmatpush3.bf16.msra.mxu0 %v2354_v3  ;;  %2387 = vmatprep.subr.bf16.mxu1 %v2386_v7  ;;  %v2362_v16 = vpack.c.bf16 %v651_v13, %v650_v11  ;;  %v652_v18 = vld [vmem:[#allocation8 + $0x30] sm:$0xff]  ;;  %v653_v19 = vld [vmem:[#allocation8 + $0x38] sm:$0xff]  ;;  %s3756_s16 = sld [smem:[#allocation27_spill]]  ;;  %s3757_s29 = sld [smem:[#allocation39_spill]] }
 0x117   : > { %2359 = vmatprep.subr.bf16.mxu0 %v2358_v8  ;;  %2389 = vmatpush3.bf16.msra.mxu1 %v2386_v7  ;;  %v2394_v17 = vpack.c.bf16 %v667_v15, %v666_v14  ;;  %v668_v20 = vld [vmem:[#allocation10 + $0x30] sm:$0xff]  ;;  %v669_v21 = vld [vmem:[#allocation10 + $0x38] sm:$0xff]  ;;  %v2366_v22 = vpack.c.bf16 %v653_v19, %v652_v18  ;;  %v654_v24 = vld [vmem:[#allocation8 + $0x40] sm:$0xff]  ;;  %s1836_s9 = scalar_lea.sflag [#allocation4], %s3499_s25 }
 0x118   : > { %2391 = vmatprep.subr.bf16.mxu1 %v2390_v12  ;;  %v2398_v23 = vpack.c.bf16 %v669_v21, %v668_v20  ;;  %v655_v25 = vld [vmem:[#allocation8 + $0x48] sm:$0xff]  ;;  %v3531_v26 = vld [vmem:[%s561_s1] sm:$0xff]  ;;  %v657_v32 = vld [vmem:[#allocation8 + $0x58] sm:$0xff] }
 0x119   : > { %v670_v27 = vld [vmem:[#allocation10 + $0x40] sm:$0xff]  ;;  %v671_v28 = vld [vmem:[#allocation10 + $0x48] sm:$0xff]  ;;  %2191 = vmatprep.mubr.f32.mxu0 %v3531_v26  ;;  %2226 = vmatprep.mubr.f32.mxu1 %v3531_v26  ;;  %v2370_v29 = vpack.c.bf16 %v655_v25, %v654_v24  ;;  %v656_v31 = vld [vmem:[#allocation8 + $0x50] sm:$0xff] }
 0x11a   : > { %2361 = vmatpush3.bf16.msra.mxu0 %v2358_v8  ;;  %v2402_v30 = vpack.c.bf16 %v671_v28, %v670_v27  ;;  %v672_v33 = vld [vmem:[#allocation10 + $0x50] sm:$0xff]  ;;  %v673_v34 = vld [vmem:[#allocation10 + $0x58] sm:$0xff]  ;;  %v2374_v35 = vpack.c.bf16 %v657_v32, %v656_v31  ;;  %v658_v37 = vld [vmem:[#allocation8 + $0x60] sm:$0xff] }
 0x11b   : > { %2363 = vmatprep.subr.bf16.mxu0 %v2362_v16  ;;  %2393 = vmatpush3.bf16.msra.mxu1 %v2390_v12  ;;  %v2406_v36 = vpack.c.bf16 %v673_v34, %v672_v33  ;;  %v659_v38 = vld [vmem:[#allocation8 + $0x68] sm:$0xff]  ;;  %v674_v39 = vld [vmem:[#allocation10 + $0x60] sm:$0xff]  ;;  %v660_v43 = vld [vmem:[#allocation8 + $0x70] sm:$0xff] }
 0x11c   : > { %2395 = vmatprep.subr.bf16.mxu1 %v2394_v17  ;;  %v675_v40 = vld [vmem:[#allocation10 + $0x68] sm:$0xff]  ;;  %v2378_v41 = vpack.c.bf16 %v659_v38, %v658_v37  ;;  %v661_v44 = vld [vmem:[#allocation8 + $0x78] sm:$0xff]  ;;  %v676_v45 = vld [vmem:[#allocation10 + $0x70] sm:$0xff]  ;;  %s3758_s18 = smov %s3757_s29  ;;  %p3759_p9 = scmp.ne.s32.totalorder %s3756_s16, 0 }
 0x11d   : > { %v2410_v42 = vpack.c.bf16 %v675_v40, %v674_v39  ;;  %v677_v46 = vld [vmem:[#allocation10 + $0x78] sm:$0xff]  ;;  %v2382_v47 = vpack.c.bf16 %v661_v44, %v660_v43  ;;  %v2040_v51 = vld [vmem:[%s3750_s7] ss:$0 sm:$0xff]  ;;  %v727_v58 = vld [vmem:[#allocation13 + $0x8] sm:$0xff] }
 0x11e   : > { %2365 = vmatpush3.bf16.msra.mxu0 %v2362_v16  ;;  %v2414_v48 = vpack.c.bf16 %v677_v46, %v676_v45  ;;  %v3537_v49 = vld [vmem:[%s561_s1 + $0x8] sm:$0xff]  ;;  %v2041_v53 = vld [vmem:[%s3751_s4] ss:$0 sm:$0xff]  ;;  %v728_v3 = vld [vmem:[#allocation13 + $0x10] sm:$0xff]  ;;  %s635_s1 = scalar_lea.vmem [#allocation16], %s3502_s13  ;;  %s3091_s13 = smov [#allocation16]  }
 0x11f   : > { %2367 = vmatprep.subr.bf16.mxu0 %v2366_v22  ;;  %2397 = vmatpush3.bf16.msra.mxu1 %v2394_v17  ;;  %v641_v57 = vld [vmem:[%s543_s8 + $0x8] sm:$0xff]  ;;  %v730_v59 = vld [vmem:[#allocation13 + $0x20] sm:$0xff]  ;;  %v736_v7 = vld [vmem:[#allocation13 + $0x50] sm:$0xff]  ;;  %s1849_s22 = sshll.u32 %s635_s1, 4  ;;  %s3613_s22 = int_to_ptr.vmem [resolvable:$true] %s1849_s22 }
 0x120   : > { %2399 = vmatprep.subr.bf16.mxu1 %v2398_v23  ;;  %v640_v62 = vld [vmem:[%s543_s8] sm:$0xff]  ;;  %v729_v2 = vld [vmem:[#allocation13 + $0x18] sm:$0xff]  ;;  %v731_v4 = vld [vmem:[#allocation13 + $0x28] sm:$0xff]  ;;  %v2418_v5 = vpack.c.bf16 %v730_v59, %v727_v58  ;;  %s2993_s19 = scalar_lea.vmem %s3613_s22, 256 }
 0x121   : > { %v726_v63 = vld [vmem:[#allocation13] sm:$0xff]  ;;  %v733_v6 = vld [vmem:[#allocation13 + $0x38] sm:$0xff]  ;;  %v2450_v13 = vpack.c.bf16 %v731_v4, %v728_v3  ;;  %v732_v15 = vld [vmem:[#allocation13 + $0x30] sm:$0xff]  ;;  %p2994_p2 = scmp.ne.s32.totalorder %s3613_s22, %s2993_s19 }
 0x122   : > { %2369 = vmatpush3.bf16.msra.mxu0 %v2366_v22  ;;  %v734_v8 = vld [vmem:[#allocation13 + $0x40] sm:$0xff]  ;;  %v737_v9 = vld [vmem:[#allocation13 + $0x58] sm:$0xff]  ;;  %v2420_v12 = vpack.c.bf16 %v729_v2, %v726_v63  ;;  %v2422_v14 = vpack.c.bf16 %v736_v7, %v733_v6  ;;  %v735_v16 = vld [vmem:[#allocation13 + $0x48] sm:$0xff] }
 0x123   : > { %2371 = vmatprep.subr.bf16.mxu0 %v2370_v29  ;;  %2401 = vmatpush3.bf16.msra.mxu1 %v2398_v23  ;;  %v642_v10 = vld [vmem:[%s552_s21] sm:$0xff]  ;;  %v643_v11 = vld [vmem:[%s552_s21 + $0x8] sm:$0xff]  ;;  %v2454_v17 = vpack.c.bf16 %v737_v9, %v734_v8  ;;  %v2424_v22 = vpack.c.bf16 %v735_v16, %v732_v15  ;;  %s2060_s21 = sshll.u32 %s3743_s27, 8  ;;  %p2995_p3 = pnand %p2994_p2, %p3759_p9 }
 0x124   : > { %2403 = vmatprep.subr.bf16.mxu1 %v2402_v30  ;;  %v739_v18 = vld [vmem:[#allocation13 + $0x68] sm:$0xff]  ;;  %v742_v19 = vld [vmem:[#allocation13 + $0x80] sm:$0xff]  ;;  %v740_v20 = vld [vmem:[#allocation13 + $0x70] sm:$0xff]  ;;  %s3611_s4 = scalar_lea.hbm %s3757_s29, %s2060_s21  ;;  %s2997_s27 = sshll.u32 %s3091_s13, 4  ;;  %s2998_s27 = int_to_ptr.vmem [resolvable:$false] %s2997_s27 }
 0x125   : > { %v743_v21 = vld [vmem:[#allocation13 + $0x88] sm:$0xff]  ;;  %v2426_v23 = vpack.c.bf16 %v742_v19, %v739_v18  ;;  %v738_v24 = vld [vmem:[#allocation13 + $0x60] sm:$0xff]  ;;  %v741_v25 = vld [vmem:[#allocation13 + $0x78] sm:$0xff]  ;;  %p2996_p10 = pneg %p2995_p3  ;;  %p3000_p1 = scmp.lt.s32.totalorder %s3613_s22, %s2998_s27 }
 0x126   : > { %2373 = vmatpush3.bf16.msra.mxu0 %v2370_v29  ;;  %v2458_v27 = vpack.c.bf16 %v743_v21, %v740_v20  ;;  %v745_v28 = vld [vmem:[#allocation13 + $0x98] sm:$0xff]  ;;  %v748_v29 = vld [vmem:[#allocation13 + $0xb0] sm:$0xff]  ;;  %v2428_v32 = vpack.c.bf16 %v741_v25, %v738_v24  ;;  %v751_v37 = vld [vmem:[#allocation13 + $0xc8] sm:$0xff] }
 0x127   : > { %2375 = vmatprep.subr.bf16.mxu0 %v2374_v35  ;;  %2405 = vmatpush3.bf16.msra.mxu1 %v2402_v30  ;;  %v746_v30 = vld [vmem:[#allocation13 + $0xa0] sm:$0xff]  ;;  %v749_v31 = vld [vmem:[#allocation13 + $0xb8] sm:$0xff]  ;;  %v2430_v33 = vpack.c.bf16 %v748_v29, %v745_v28  ;;  %v744_v34 = vld [vmem:[#allocation13 + $0x90] sm:$0xff] }
 0x128   : > { %2407 = vmatprep.subr.bf16.mxu1 %v2406_v36  ;;  %v754_v38 = vld [vmem:[#allocation13 + $0xe0] sm:$0xff]  ;;  %v752_v39 = vld [vmem:[#allocation13 + $0xd0] sm:$0xff]  ;;  %v755_v40 = vld [vmem:[#allocation13 + $0xe8] sm:$0xff] }
 0x129   : > { %v750_v43 = vld [vmem:[#allocation13 + $0xc0] sm:$0xff]  ;;  %v753_v44 = vld [vmem:[#allocation13 + $0xd8] sm:$0xff]  ;;  %v2466_v45 = vpack.c.bf16 %v755_v40, %v752_v39  ;;  %v764_v59 = vld [vmem:[#allocation13 + $0x130] sm:$0xff] }
 0x12a   : > { %2377 = vmatpush3.bf16.msra.mxu0 %v2374_v35  ;;  %v747_v35 = vld [vmem:[#allocation13 + $0xa8] sm:$0xff]  ;;  %v757_v46 = vld [vmem:[#allocation13 + $0xf8] sm:$0xff]  ;;  %v766_v58 = vld [vmem:[#allocation13 + $0x140] sm:$0xff] }
 0x12b   : > { %2379 = vmatprep.subr.bf16.mxu0 %v2378_v41  ;;  %2409 = vmatpush3.bf16.msra.mxu1 %v2406_v36  ;;  %v2462_v36 = vpack.c.bf16 %v749_v31, %v746_v30  ;;  %v762_v63 = vld [vmem:[#allocation13 + $0x120] sm:$0xff]  ;;  %v769_v3 = vld [vmem:[#allocation13 + $0x158] sm:$0xff]  ;;  %v772_v4 = vld [vmem:[#allocation13 + $0x170] sm:$0xff] }
 0x12c   : > { %2411 = vmatprep.subr.bf16.mxu1 %v2410_v42  ;;  %v768_v6 = vld [vmem:[#allocation13 + $0x150] sm:$0xff]  ;;  %v771_v7 = vld [vmem:[#allocation13 + $0x168] sm:$0xff]  ;;  %v770_v8 = vld [vmem:[#allocation13 + $0x160] sm:$0xff] }
 0x12d   : > { %v2448_v9 = vpack.c.bf16 %v771_v7, %v768_v6  ;;  %v680_v15 = vld [vmem:[#allocation11 + $0x10] sm:$0xff]  ;;  %v683_v16 = vld [vmem:[#allocation11 + $0x28] sm:$0xff]  ;;  %v2043_v24 = vld [vmem:[%s3752_s24] ss:$0 sm:$0xff]  ;;  %s2999_s24 = scalar_lea.vmem %s2998_s27, 512 }
 0x12e   : > { %2381 = vmatpush3.bf16.msra.mxu0 %v2378_v41  ;;  %v2432_v41 = vpack.c.bf16 %v747_v35, %v744_v34  ;;  %v685_v25 = vld [vmem:[#allocation11 + $0x38] sm:$0xff]  ;;  %v686_v28 = vld [vmem:[#allocation11 + $0x40] sm:$0xff]  ;;  %p3001_p5 = scmp.lt.s32.totalorder %s2999_s24, %s2993_s19 }
 0x12f   : > { %2383 = vmatprep.subr.bf16.mxu0 %v2382_v47  ;;  %2413 = vmatpush3.bf16.msra.mxu1 %v2410_v42  ;;  %v2434_v42 = vpack.c.bf16 %v754_v38, %v751_v37  ;;  %v689_v29 = vld [vmem:[#allocation11 + $0x58] sm:$0xff]  ;;  %v3580_v30 = vld [vmem:[%s3753_s11] ss:$0 sm:$0xff]  ;;  %v684_v37 = vld [vmem:[#allocation11 + $0x30] sm:$0xff] }
 0x130   : > { %2415 = vmatprep.subr.bf16.mxu1 %v2414_v48  ;;  %v687_v38 = vld [vmem:[#allocation11 + $0x48] sm:$0xff]  ;;  %v705_v6 = vld [vmem:[#allocation11 + $0xd8] sm:$0xff]  ;;  %p3002_p4 = por %p3001_p5, %p3000_p1 }
 0x132   : > { %2385 = vmatpush3.bf16.msra.mxu0 %v2382_v47  ;;  %v760_v47 = vld [vmem:[#allocation13 + $0x110] sm:$0xff]  ;;  %p3003_p0 = pnand %p3002_p4, %p2996_p10 }
 0x133   : > { %2417 = vmatpush3.bf16.msra.mxu1 %v2414_v48  ;;  %2229 = vmatprep.subr.mxu0 %v3089_v50  ;;  %v758_v48 = vld [vmem:[#allocation13 + $0x100] sm:$0xff] }
 0x134   : > { %2234 = vmatprep.subr.mxu1 %v3089_v50 }
 0x135   : > { %2192 = vmatmul.mubr.f32.vlgmr.msra.gmra.mrb[0].mxu0 %v3537_v49 }
 0x136   : > { %2227 = vmatmul.mubr.f32.vlgmr.msra.gmra.mrb[0].mxu1 %v3537_v49  ;;  %2231 = vmatprep.mubr.msk.f32.mxu0 %vm3090_vm0, %v3089_v50 }
 0x137   : > { %2236 = vmatprep.mubr.msk.f32.mxu1 %vm3090_vm0, %v3089_v50 }
 0x208   : > { %v2193_v52 = vpop.f32.mrb[0].mxu0 }
 0x209   : > { %v956_v54 = vadd.f32 %v2193_v52, %v2040_v51  ;;  %v950_v55 = vpop.f32.mrb[1].mxu0  ;;  %v2228_v56 = vpop.f32.mrb[0].mxu1  ;;  %v2436_v52 = vpack.c.bf16 %v753_v44, %v750_v43  ;;  %v694_v43 = vld [vmem:[#allocation11 + $0x80] sm:$0xff] }
 0x20a   : > { %v951_v60 = vadd.f32 %v2040_v51, %v950_v55  ;;  %v1025_v61 = vpop.f32.mrb[1].mxu1  ;;  %v1031_v0 = vadd.f32 %v2228_v56, %v2041_v53  ;;  %v761_v51 = vld [vmem:[#allocation13 + $0x118] sm:$0xff]  ;;  %v759_v55 = vld [vmem:[#allocation13 + $0x108] sm:$0xff] }
 0x20b   : > { %2235 = vmatpush3.msra.mxu1 %v956_v54  ;;  %v1026_v1 = vadd.f32 %v2041_v53, %v1025_v61  ;;  %v2438_v53 = vpack.c.bf16 %v760_v47, %v757_v46  ;;  %v756_v54 = vld [vmem:[#allocation13 + $0xf0] sm:$0xff]  ;;  %v2470_v56 = vpack.c.bf16 %v761_v51, %v758_v48  ;;  %v695_v46 = vld [vmem:[#allocation11 + $0x88] sm:$0xff]  ;;  %v2488_v47 = vpack.c.bf16 %v687_v38, %v684_v37  ;;  %v690_v51 = vld [vmem:[#allocation11 + $0x60] sm:$0xff] }
 0x20c   : > { %2230 = vmatpush3.msra.mxu0 %v951_v60  ;;  %2237 = vmatmul.mubr.msk.f32.vlgmr.msra.gmra.mrb[2].mxu1 %vm1034_vm1, %v641_v57  ;;  %v763_v57 = vld [vmem:[#allocation13 + $0x128] sm:$0xff]  ;;  %v2440_v61 = vpack.c.bf16 %v759_v55, %v756_v54  ;;  %v697_v54 = vld [vmem:[#allocation11 + $0x98] sm:$0xff]  ;;  %v700_v55 = vld [vmem:[#allocation11 + $0xb0] sm:$0xff] }
 0x20d   : > { %2232 = vmatmul.mubr.msk.f32.vlgmr.msra.gmra.mrb[2].mxu0 %vm1034_vm1, %v640_v62  ;;  %2239 = vmatprep.subr.mxu0 %v3089_v50  ;;  %v767_v60 = vld [vmem:[#allocation13 + $0x148] sm:$0xff]  ;;  %v2442_v62 = vpack.c.bf16 %v766_v58, %v763_v57  ;;  %v701_v57 = vld [vmem:[#allocation11 + $0xb8] sm:$0xff] }
 0x20e   : > { %2244 = vmatprep.subr.mxu1 %v3089_v50  ;;  %2240 = vmatpush3.msra.mxu0 %v1026_v1  ;;  %v2474_v1 = vpack.c.bf16 %v767_v60, %v764_v59  ;;  %v2494_v59 = vpack.c.bf16 %v700_v55, %v697_v54  ;;  %v696_v60 = vld [vmem:[#allocation11 + $0x90] sm:$0xff]  ;;  %v775_v38 = vld [vmem:[#allocation14 + $0x8] sm:$0xff]  ;;  %v785_v54 = vld [vmem:[#allocation14 + $0x58] sm:$0xff] }
 0x20f   : > { %2245 = vmatpush3.msra.mxu1 %v1031_v0  ;;  %2241 = vmatprep.mubr.msk.f32.mxu0 %vm3090_vm0, %v3089_v50  ;;  %v765_v0 = vld [vmem:[#allocation13 + $0x138] sm:$0xff] }
 0x210   : > { %2246 = vmatprep.mubr.msk.f32.mxu1 %vm3090_vm0, %v3089_v50  ;;  %2419 = vmatprep.subr.bf16.mxu0 %v2418_v5  ;;  %v2444_v2 = vpack.c.bf16 %v765_v0, %v762_v63  ;;  %v2446_v5 = vpack.c.bf16 %v772_v4, %v769_v3  ;;  %v703_v63 = vld [vmem:[#allocation11 + $0xc8] sm:$0xff]  ;;  %v706_v0 = vld [vmem:[#allocation11 + $0xe0] sm:$0xff] }
 0x211   : > { %2242 = vmatmul.mubr.msk.f32.vlgmr.msra.gmra.mrb[4].mxu0 %vm1034_vm1, %v642_v10  ;;  %2247 = vmatmul.mubr.msk.f32.vlgmr.msra.gmra.mrb[4].mxu1 %vm1034_vm1, %v643_v11  ;;  %v773_v10 = vld [vmem:[#allocation13 + $0x178] sm:$0xff]  ;;  %v2498_v4 = vpack.c.bf16 %v706_v0, %v703_v63  ;;  %v788_v63 = vld [vmem:[#allocation14 + $0x70] sm:$0xff]  ;;  %v791_v0 = vld [vmem:[#allocation14 + $0x88] sm:$0xff] }
 0x212   : > { %2421 = vmatpush1.bf16.msra.mxu0 %v2420_v12  ;;  %2451 = vmatprep.subr.bf16.mxu1 %v2450_v13  ;;  %v2478_v11 = vpack.c.bf16 %v773_v10, %v770_v8  ;;  %v679_v12 = vld [vmem:[#allocation11 + $0x8] sm:$0xff]  ;;  %v709_v8 = vld [vmem:[#allocation11 + $0xf8] sm:$0xff]  ;;  %v710_v10 = vld [vmem:[#allocation11 + $0x100] sm:$0xff] }
 0x213   : > { %2453 = vmatpush3.bf16.msra.mxu1 %v2450_v13  ;;  %2423 = vmatprep.subr.bf16.mxu0 %v2422_v14  ;;  %v682_v13 = vld [vmem:[#allocation11 + $0x20] sm:$0xff] }
 0x214   : > { %2455 = vmatprep.subr.bf16.mxu1 %v2454_v17  ;;  %1395 = vmatprep.mubr.f32.mxu0 %v3089_v50  ;;  %v2482_v14 = vpack.c.bf16 %v682_v13, %v679_v12 }
 0x216   : > { %2425 = vmatpush1.bf16.msra.mxu0 %v2424_v22  ;;  %v678_v22 = vld [vmem:[#allocation11] sm:$0xff] }
 0x217   : > { %2457 = vmatpush3.bf16.msra.mxu1 %v2454_v17  ;;  %2427 = vmatprep.subr.bf16.mxu0 %v2426_v23  ;;  %v2514_v17 = vpack.c.bf16 %v683_v16, %v680_v15  ;;  %v681_v23 = vld [vmem:[#allocation11 + $0x18] sm:$0xff]  ;;  %v711_v15 = vld [vmem:[#allocation11 + $0x108] sm:$0xff] }
 0x218   : > { %2459 = vmatprep.subr.bf16.mxu1 %v2458_v27 }
 0x21a   : > { %2429 = vmatpush1.bf16.msra.mxu0 %v2428_v32 }
 0x21b   : > { %2461 = vmatpush3.bf16.msra.mxu1 %v2458_v27  ;;  %2431 = vmatprep.subr.bf16.mxu0 %v2430_v33  ;;  %v688_v27 = vld [vmem:[#allocation11 + $0x50] sm:$0xff]  ;;  %v2484_v33 = vpack.c.bf16 %v681_v23, %v678_v22 }
 0x21c   : > { %2463 = vmatprep.subr.bf16.mxu1 %v2462_v36  ;;  %v2486_v40 = vpack.c.bf16 %v688_v27, %v685_v25  ;;  %v717_v25 = vld [vmem:[#allocation11 + $0x138] sm:$0xff] }
 0x21e   : > { %2433 = vmatpush1.bf16.msra.mxu0 %v2432_v41  ;;  %v2518_v41 = vpack.c.bf16 %v689_v29, %v686_v28  ;;  %v721_v28 = vld [vmem:[#allocation11 + $0x158] sm:$0xff]  ;;  %v724_v29 = vld [vmem:[#allocation11 + $0x170] sm:$0xff] }
 0x21f   : > { %2465 = vmatpush3.bf16.msra.mxu1 %v2462_v36  ;;  %2435 = vmatprep.subr.bf16.mxu0 %v2434_v42  ;;  %v691_v42 = vld [vmem:[#allocation11 + $0x68] sm:$0xff] }
 0x220   : > { %2467 = vmatprep.subr.bf16.mxu1 %v2466_v45  ;;  %v2490_v48 = vpack.c.bf16 %v694_v43, %v691_v42 }
 0x222   : > { %2437 = vmatpush1.bf16.msra.mxu0 %v2436_v52  ;;  %v693_v52 = vld [vmem:[#allocation11 + $0x78] sm:$0xff] }
 0x223   : > { %2469 = vmatpush3.bf16.msra.mxu1 %v2466_v45  ;;  %2439 = vmatprep.subr.bf16.mxu0 %v2438_v53  ;;  %v692_v45 = vld [vmem:[#allocation11 + $0x70] sm:$0xff]  ;;  %v2492_v58 = vpack.c.bf16 %v693_v52, %v690_v51 }
 0x224   : > { %2471 = vmatprep.subr.bf16.mxu1 %v2470_v56  ;;  %v2522_v53 = vpack.c.bf16 %v695_v46, %v692_v45  ;;  %v774_v45 = vld [vmem:[#allocation14] sm:$0xff]  ;;  %v777_v46 = vld [vmem:[#allocation14 + $0x18] sm:$0xff] }
 0x225   : > { %v2548_v52 = vpack.c.bf16 %v777_v46, %v774_v45  ;;  %v818_v45 = vld [vmem:[#allocation14 + $0x160] sm:$0xff]  ;;  %v821_v46 = vld [vmem:[#allocation14 + $0x178] sm:$0xff] }
 0x226   : > { %2441 = vmatpush1.bf16.msra.mxu0 %v2440_v61  ;;  %v699_v61 = vld [vmem:[#allocation11 + $0xa8] sm:$0xff] }
 0x227   : > { %2473 = vmatpush3.bf16.msra.mxu1 %v2470_v56  ;;  %2443 = vmatprep.subr.bf16.mxu0 %v2442_v62  ;;  %v698_v56 = vld [vmem:[#allocation11 + $0xa0] sm:$0xff]  ;;  %v2496_v3 = vpack.c.bf16 %v699_v61, %v696_v60 }
 0x228   : > { %2475 = vmatprep.subr.bf16.mxu1 %v2474_v1  ;;  %v2526_v62 = vpack.c.bf16 %v701_v57, %v698_v56  ;;  %v780_v56 = vld [vmem:[#allocation14 + $0x30] sm:$0xff]  ;;  %v783_v57 = vld [vmem:[#allocation14 + $0x48] sm:$0xff]  ;;  %v790_v60 = vld [vmem:[#allocation14 + $0x80] sm:$0xff] }
 0x22a   : > { %2445 = vmatpush1.bf16.msra.mxu0 %v2444_v2  ;;  %v707_v2 = vld [vmem:[#allocation11 + $0xe8] sm:$0xff] }
 0x22b   : > { %2477 = vmatpush3.bf16.msra.mxu1 %v2474_v1  ;;  %2447 = vmatprep.subr.bf16.mxu0 %v2446_v5  ;;  %v704_v1 = vld [vmem:[#allocation11 + $0xd0] sm:$0xff]  ;;  %v702_v5 = vld [vmem:[#allocation11 + $0xc0] sm:$0xff] }
 0x22c   : > { %2479 = vmatprep.subr.bf16.mxu1 %v2478_v11  ;;  %v2530_v7 = vpack.c.bf16 %v707_v2, %v704_v1  ;;  %v2500_v12 = vpack.c.bf16 %v705_v6, %v702_v5  ;;  %v786_v2 = vld [vmem:[#allocation14 + $0x60] sm:$0xff]  ;;  %v796_v5 = vld [vmem:[#allocation14 + $0xb0] sm:$0xff]  ;;  %v797_v6 = vld [vmem:[#allocation14 + $0xb8] sm:$0xff] }
 0x22e   : > { %2449 = vmatpush1.bf16.msra.mxu0 %v2448_v9  ;;  %v712_v9 = vld [vmem:[#allocation11 + $0x110] sm:$0xff] }
 0x22f   : > { %2481 = vmatpush3.bf16.msra.mxu1 %v2478_v11  ;;  %2483 = vmatprep.subr.bf16.mxu0 %v2482_v14  ;;  %v713_v11 = vld [vmem:[#allocation11 + $0x118] sm:$0xff]  ;;  %v2502_v13 = vpack.c.bf16 %v712_v9, %v709_v8  ;;  %v708_v14 = vld [vmem:[#allocation11 + $0xf0] sm:$0xff]  ;;  %v795_v9 = vld [vmem:[#allocation14 + $0xa8] sm:$0xff] }
 0x230   : > { %2515 = vmatprep.subr.bf16.mxu1 %v2514_v17  ;;  %v2534_v16 = vpack.c.bf16 %v713_v11, %v710_v10  ;;  %v2504_v22 = vpack.c.bf16 %v711_v15, %v708_v14  ;;  %v792_v8 = vld [vmem:[#allocation14 + $0x90] sm:$0xff]  ;;  %v799_v10 = vld [vmem:[#allocation14 + $0xc8] sm:$0xff]  ;;  %v802_v11 = vld [vmem:[#allocation14 + $0xe0] sm:$0xff] }
 0x231   : > { %v800_v14 = vld [vmem:[#allocation14 + $0xd0] sm:$0xff]  ;;  %v803_v15 = vld [vmem:[#allocation14 + $0xe8] sm:$0xff] }
 0x2df   : > { %v3572_v18 = vpop.f32.mrb[2].mxu1 }
 0x2e0   : > { %v1104_v19 = vpop.f32.mrb[2].mxu0  ;;  %v2238_v20 = vpop.f32.mrb[3].mxu1 }
 0x2e1   : > { %v2233_v21 = vpop.f32.mrb[3].mxu0  ;;  %v3583_v44 = vadd.f32 %v3580_v30, %v1104_v19  ;;  %v718_v19 = vld [vmem:[#allocation11 + $0x140] sm:$0xff]  ;;  %v716_v20 = vld [vmem:[#allocation11 + $0x130] sm:$0xff] }
 0x2e2   : > { %v719_v21 = vld [vmem:[#allocation11 + $0x148] sm:$0xff] }
 0x2e3   : > { %v2538_v27 = vpack.c.bf16 %v719_v21, %v716_v20  ;;  %v805_v20 = vld [vmem:[#allocation14 + $0xf8] sm:$0xff]  ;;  %v808_v21 = vld [vmem:[#allocation14 + $0x110] sm:$0xff] }
 0x2e4   : > { %v1250_v31 = vpop.f32.mrb[4].mxu0  ;;  %v1323_v32 = vpop.f32.mrb[4].mxu1 }
 0x2e5   : > { %v1329_v34 = vadd.f32 %v2043_v24, %v1250_v31  ;;  %v1330_v35 = vadd.f32 %v2043_v24, %v1323_v32  ;;  %v2243_v36 = vpop.f32.mrb[5].mxu0  ;;  %v2248_v39 = vpop.f32.mrb[5].mxu1  ;;  %v714_v24 = vld [vmem:[#allocation11 + $0x120] sm:$0xff]  ;;  %v725_v32 = vld [vmem:[#allocation11 + $0x178] sm:$0xff] }
 0x2e6   : > { %v722_v31 = vld [vmem:[#allocation11 + $0x160] sm:$0xff]  ;;  %v723_v36 = vld [vmem:[#allocation11 + $0x168] sm:$0xff] }
 0x2e7   : > { %1396 = vmatmul.mubr.f32.vlgmr.msra.gmra.mrb[6].mxu0 %v1329_v34  ;;  %2281 = vmatprep.mubr.f32.mxu1 %v1329_v34  ;;  %v2510_v34 = vpack.c.bf16 %v724_v29, %v721_v28  ;;  %v2542_v37 = vpack.c.bf16 %v725_v32, %v722_v31  ;;  %v778_v39 = vld [vmem:[#allocation14 + $0x20] sm:$0xff]  ;;  %v804_v28 = vld [vmem:[#allocation14 + $0xf0] sm:$0xff]  ;;  %v807_v29 = vld [vmem:[#allocation14 + $0x108] sm:$0xff] }
 0x2e8   : > { %2485 = vmatpush1.bf16.msra.mxu0 %v2484_v33  ;;  %2282 = vmatmul.mubr.f32.vlgmr.msra.gmra.mrb[6].mxu1 %v1330_v35  ;;  %v2508_v33 = vpack.c.bf16 %v717_v25, %v714_v24  ;;  %v2546_v43 = vpack.c.bf16 %v778_v39, %v775_v38  ;;  %v806_v24 = vld [vmem:[#allocation14 + $0x100] sm:$0xff]  ;;  %v809_v25 = vld [vmem:[#allocation14 + $0x118] sm:$0xff]  ;;  %v811_v31 = vld [vmem:[#allocation14 + $0x128] sm:$0xff] }
 0x2e9   : > { %2517 = vmatpush3.bf16.msra.mxu1 %v2514_v17  ;;  %2316 = vmatprep.mubr.f32.mxu1 %v3583_v44  ;;  %v715_v17 = vld [vmem:[#allocation11 + $0x128] sm:$0xff]  ;;  %v814_v32 = vld [vmem:[#allocation14 + $0x140] sm:$0xff]  ;;  %v813_v39 = vld [vmem:[#allocation14 + $0x138] sm:$0xff] }
 0x2ea   : > { %2487 = vmatprep.subr.bf16.mxu0 %v2486_v40  ;;  %2519 = vmatprep.subr.bf16.mxu1 %v2518_v41  ;;  %v2506_v23 = vpack.c.bf16 %v718_v19, %v715_v17  ;;  %v776_v40 = vld [vmem:[#allocation14 + $0x10] sm:$0xff]  ;;  %v798_v17 = vld [vmem:[#allocation14 + $0xc0] sm:$0xff]  ;;  %v801_v19 = vld [vmem:[#allocation14 + $0xd8] sm:$0xff] }
 0x2eb   : > { %1401 = vmatprep.mubr.f32.mxu0 %v3089_v50  ;;  %v810_v38 = vld [vmem:[#allocation14 + $0x120] sm:$0xff] }
 0x2ec   : > { %2489 = vmatpush1.bf16.msra.mxu0 %v2488_v47  ;;  %v781_v47 = vld [vmem:[#allocation14 + $0x38] sm:$0xff] }
 0x2ed   : > { %2521 = vmatpush3.bf16.msra.mxu1 %v2518_v41  ;;  %2491 = vmatprep.subr.bf16.mxu0 %v2490_v48  ;;  %v779_v41 = vld [vmem:[#allocation14 + $0x28] sm:$0xff]  ;;  %v784_v48 = vld [vmem:[#allocation14 + $0x50] sm:$0xff] }
 0x2ee   : > { %2523 = vmatprep.subr.bf16.mxu1 %v2522_v53  ;;  %1402 = vmatmul.mubr.f32.gmra.mrb[8].mxu0 %v1330_v35  ;;  %v720_v35 = vld [vmem:[#allocation11 + $0x150] sm:$0xff]  ;;  %v2578_v51 = vpack.c.bf16 %v779_v41, %v776_v40  ;;  %v2550_v55 = vpack.c.bf16 %v784_v48, %v781_v47  ;;  %v817_v40 = vld [vmem:[#allocation14 + $0x158] sm:$0xff] }
 0x2ef   : > { %1547 = vmatprep.mubr.f32.mxu0 %v3089_v50  ;;  %v2512_v42 = vpack.c.bf16 %v723_v36, %v720_v35  ;;  %v812_v35 = vld [vmem:[#allocation14 + $0x130] sm:$0xff]  ;;  %v815_v36 = vld [vmem:[#allocation14 + $0x148] sm:$0xff] }
 0x2f0   : > { %2493 = vmatpush1.bf16.msra.mxu0 %v2492_v58  ;;  %v1328_v58 = vadd.f32 %v3580_v30, %v3572_v18  ;;  %v2586_v18 = vpack.c.bf16 %v791_v0, %v788_v63  ;;  %v820_v41 = vld [vmem:[#allocation14 + $0x170] sm:$0xff] }
 0x2f1   : > { %2525 = vmatpush3.bf16.msra.mxu1 %v2522_v53  ;;  %2495 = vmatprep.subr.bf16.mxu0 %v2494_v59  ;;  %v782_v53 = vld [vmem:[#allocation14 + $0x40] sm:$0xff]  ;;  %v787_v59 = vld [vmem:[#allocation14 + $0x68] sm:$0xff]  ;;  %v2574_v47 = vpack.c.bf16 %v820_v41, %v817_v40  ;;  %v816_v48 = vld [vmem:[#allocation14 + $0x150] sm:$0xff] }
 0x2f2   : > { %2527 = vmatprep.subr.bf16.mxu1 %v2526_v62  ;;  %v2582_v61 = vpack.c.bf16 %v785_v54, %v782_v53  ;;  %v2554_v1 = vpack.c.bf16 %v790_v60, %v787_v59  ;;  %v867_v59 = vld [vmem:[%s3754_s26] sm:$0x7] }
 0x2f3   : > { %v850_v60 = vld [vmem:[%s3755_s20] sm:$0x7] }
 0x2f4   : > { %2497 = vmatpush1.bf16.msra.mxu0 %v2496_v3  ;;  %v789_v3 = vld [vmem:[#allocation14 + $0x78] sm:$0xff] }
 0x2f5   : > { %2529 = vmatpush3.bf16.msra.mxu1 %v2526_v62  ;;  %2499 = vmatprep.subr.bf16.mxu0 %v2498_v4  ;;  %v2552_v62 = vpack.c.bf16 %v783_v57, %v780_v56  ;;  %v793_v4 = vld [vmem:[#allocation14 + $0x98] sm:$0xff]  ;;  %v2556_v30 = vpack.c.bf16 %v789_v3, %v786_v2  ;;  %v852_v56 = vlaneseq }
 0x2f6   : > { %2531 = vmatprep.subr.bf16.mxu1 %v2530_v7 }
 0x2f7   : > { %v853_v57 = vshrl.u32 %v852_v56, 7 }
 0x2f8   : > { %2501 = vmatpush1.bf16.msra.mxu0 %v2500_v12 }
 0x2f9   : > { %2533 = vmatpush3.bf16.msra.mxu1 %v2530_v7  ;;  %2503 = vmatprep.subr.bf16.mxu0 %v2502_v13  ;;  %v2558_v7 = vpack.c.bf16 %v796_v5, %v793_v4  ;;  %v2560_v13 = vpack.c.bf16 %v795_v9, %v792_v8  ;;  %v858_v63 = vsub.s32 1, %v853_v57 }
 0x2fa   : > { %2535 = vmatprep.subr.bf16.mxu1 %v2534_v16 }
 0x2fb   : > { %v859_v2 = vrot.slane %v850_v60, %v858_v63  ;;  %v876_v3 = vrot.slane %v867_v59, %v858_v63 }
 0x2fc   : > { %2505 = vmatpush1.bf16.msra.mxu0 %v2504_v22  ;;  %v2594_v22 = vpack.c.bf16 %v803_v15, %v800_v14 }
 0x2fd   : > { %2537 = vmatpush3.bf16.msra.mxu1 %v2534_v16  ;;  %2507 = vmatprep.subr.bf16.mxu0 %v2506_v23  ;;  %v2562_v16 = vpack.c.bf16 %v802_v11, %v799_v10  ;;  %v2564_v23 = vpack.c.bf16 %v801_v19, %v798_v17  ;;  %v862_v17 = vsub.s32 2, %v853_v57 }
 0x2fe   : > { %2539 = vmatprep.subr.bf16.mxu1 %v2538_v27 }
 0x300   : > { %2509 = vmatpush1.bf16.msra.mxu0 %v2508_v33  ;;  %v2598_v33 = vpack.c.bf16 %v809_v25, %v806_v24 }
 0x301   : > { %2541 = vmatpush3.bf16.msra.mxu1 %v2538_v27  ;;  %2511 = vmatprep.subr.bf16.mxu0 %v2510_v34  ;;  %v2566_v27 = vpack.c.bf16 %v808_v21, %v805_v20  ;;  %v2568_v34 = vpack.c.bf16 %v807_v29, %v804_v28  ;;  %v880_v20 = vrot.slane %v867_v59, %v862_v17 }
 0x302   : > { %2543 = vmatprep.subr.bf16.mxu1 %v2542_v37  ;;  %v863_v21 = vrot.slane %v850_v60, %v862_v17 }
 0x304   : > { %2513 = vmatpush1.bf16.msra.mxu0 %v2512_v42  ;;  %v2602_v42 = vpack.c.bf16 %v815_v36, %v812_v35 }
 0x305   : > { %2545 = vmatpush3.bf16.msra.mxu1 %v2542_v37  ;;  %2547 = vmatprep.subr.bf16.mxu0 %v2546_v43  ;;  %v2570_v37 = vpack.c.bf16 %v814_v32, %v811_v31  ;;  %v2572_v43 = vpack.c.bf16 %v813_v39, %v810_v38 }
 0x306   : > { %2579 = vmatprep.subr.bf16.mxu1 %v2578_v51 }
 0x307   : > { %1548 = vmatmul.mubr.f32.vlgmr.msra.gmra.mrb[6].mxu0 %v3583_v44  ;;  %v794_v44 = vld [vmem:[#allocation14 + $0xa0] sm:$0xff] }
 0x308   : > { %2317 = vmatmul.mubr.f32.vlgmr.msra.gmra.mrb[6].mxu1 %v1328_v58  ;;  %2549 = vmatpush1.bf16.msra.mxu0 %v2548_v52  ;;  %v2590_v12 = vpack.c.bf16 %v797_v6, %v794_v44  ;;  %v2606_v52 = vpack.c.bf16 %v821_v46, %v818_v45  ;;  %v2612_v6 = vadd.f32 %v876_v3, %v859_v2 }
 0x309   : > { %1553 = vmatprep.mubr.f32.mxu0 %v3089_v50  ;;  %2551 = vmatprep.subr.bf16.mxu0 %v2550_v55 }
 0x30a   : > { %2581 = vmatpush3.bf16.msra.mxu1 %v2578_v51  ;;  %2351 = vmatprep.mubr.f32.mxu1 %v3531_v26  ;;  %v819_v51 = vld [vmem:[#allocation14 + $0x168] sm:$0xff] }
 0x30b   : > { %1554 = vmatmul.mubr.f32.gmra.mrb[8].mxu0 %v1328_v58  ;;  %2583 = vmatprep.subr.bf16.mxu1 %v2582_v61  ;;  %v2576_v53 = vpack.c.bf16 %v819_v51, %v816_v48  ;;  %v854_v58 = vsub.s32 0, %v853_v57 }
 0x30c   : > { %2553 = vmatpush1.bf16.msra.mxu0 %v2552_v62  ;;  %1705 = vmatprep.mubr.f32.mxu0 %v3089_v50 }
 0x30d   : > { %2555 = vmatprep.subr.bf16.mxu0 %v2554_v1  ;;  %v872_v62 = vrot.slane %v867_v59, %v854_v58 }
 0x30e   : > { %2585 = vmatpush3.bf16.msra.mxu1 %v2582_v61  ;;  %v855_v61 = vrot.slane %v850_v60, %v854_v58 }
 0x30f   : > { %2587 = vmatprep.subr.bf16.mxu1 %v2586_v18 }
 0x310   : > { %2557 = vmatpush1.bf16.msra.mxu0 %v2556_v30 }
 0x311   : > { %2559 = vmatprep.subr.bf16.mxu0 %v2558_v7 }
 0x312   : > { %2589 = vmatpush3.bf16.msra.mxu1 %v2586_v18 }
 0x313   : > { %2591 = vmatprep.subr.bf16.mxu1 %v2590_v12 }
 0x314   : > { %2561 = vmatpush1.bf16.msra.mxu0 %v2560_v13 }
 0x315   : > { %2563 = vmatprep.subr.bf16.mxu0 %v2562_v16 }
 0x316   : > { %2593 = vmatpush3.bf16.msra.mxu1 %v2590_v12 }
 0x317   : > { %2595 = vmatprep.subr.bf16.mxu1 %v2594_v22 }
 0x318   : > { %2565 = vmatpush1.bf16.msra.mxu0 %v2564_v23 }
 0x319   : > { %2567 = vmatprep.subr.bf16.mxu0 %v2566_v27 }
 0x31a   : > { %2597 = vmatpush3.bf16.msra.mxu1 %v2594_v22 }
 0x31b   : > { %2599 = vmatprep.subr.bf16.mxu1 %v2598_v33 }
 0x31c   : > { %2569 = vmatpush1.bf16.msra.mxu0 %v2568_v34 }
 0x31d   : > { %2571 = vmatprep.subr.bf16.mxu0 %v2570_v37 }
 0x31e   : > { %2601 = vmatpush3.bf16.msra.mxu1 %v2598_v33 }
 0x31f   : > { %2603 = vmatprep.subr.bf16.mxu1 %v2602_v42 }
 0x320   : > { %2573 = vmatpush1.bf16.msra.mxu0 %v2572_v43 }
 0x321   : > { %2575 = vmatprep.subr.bf16.mxu0 %v2574_v47 }
 0x322   : > { %2605 = vmatpush3.bf16.msra.mxu1 %v2602_v42 }
 0x323   : > { %2607 = vmatprep.subr.bf16.mxu1 %v2606_v52 }
 0x324   : > { %2577 = vmatpush1.bf16.msra.mxu0 %v2576_v53 }
 0x326   : > { %2609 = vmatpush3.bf16.msra.mxu1 %v2606_v52 }
 0x327   : > { %1706 = vmatmul.mubr.f32.vlgmr.msra.gmra.mrb[6].mxu0 %v3531_v26 }
 0x328   : > { %1711 = vmatprep.mubr.f32.mxu0 %v3089_v50  ;;  %v2610_v50 = vadd.f32 %v872_v62, %v855_v61 }
 0x329   : > { %2352 = vmatmul.mubr.f32.vlgmr.msra.gmra.mrb[8].mxu1 %v3537_v49 }
 0x32b   : > { %1712 = vmatmul.mubr.f32.gmra.mrb[8].mxu0 %v3537_v49 }
 0x3db   : > { %v2318_v54 = vpop.f32.mrb[6].mxu1 }
 0x3dc   : > { %v1626_v55 = vpop.f32.mrb[7].mxu1  ;;  %v1640_v34 = vadd.f32 %v2318_v54, %v863_v21 }
 0x3dd   : > { %v1637_v25 = vadd.f32 %v1626_v55, %v863_v21 }
 0x3fa   : > { %v1707_v0 = vpop.f32.mrb[6].mxu0 }
 0x3fb   : > { %v2611_v1 = vadd.f32 %v2610_v50, %v1707_v0  ;;  %v1709_v4 = vpop.f32.mrb[7].mxu0 }
 0x3fc   : > { %v2353_v5 = vpop.f32.mrb[8].mxu1  ;;  %v2613_v10 = vadd.f32 %v2612_v6, %v1709_v4 }
 0x3fd   : > { %v2048_v18 = vmul.f32 -1.442695, %v2611_v1  ;;  %v1784_v30 = vpop.f32.mrb[9].mxu1  ;;  %v1790_v27 = vadd.f32 %v2353_v5, %v880_v20 }
 0x3fe   : > { %v1713_v44 = vpop.f32.mrb[8].mxu0  ;;  %v2050_v11 = vmul.f32 -1.442695, %v2613_v10  ;;  %v1785_v22 = vadd.f32 %v1784_v30, %v880_v20 }
 0x3ff   : > { %2743 = vpow2.f32 %v2048_v18  ;;  %v2615_v7 = vadd.f32 %v2610_v50, %v1713_v44  ;;  %v1715_v8 = vpop.f32.mrb[9].mxu0 }
 0x400   : > { %v2617_v12 = vadd.f32 %v2612_v6, %v1715_v8 }
 0x401   : > { %v2049_v9 = vmul.f32 -1.442695, %v2615_v7 }
 0x402   : > { %v2051_v15 = vmul.f32 -1.442695, %v2617_v12 }
 0x403   : > { %2745 = vpow2.f32 %v2049_v9 }
 0x404   : > { %2747 = vpow2.f32 %v2050_v11 }
 0x409   : > { %v2744_v13 = vpop.eup %2743 }
 0x40a   : > { %v1801_v14 = vadd.f32 1.0, %v2744_v13 }
 0x40c   : > { %2749 = vrcp.f32 %v1801_v14 }
 0x40d   : > { %v2746_v16 = vpop.eup %2745  ;;  %2751 = vpow2.f32 %v2051_v15 }
 0x40e   : > { %v1802_v19 = vadd.f32 1.0, %v2746_v16  ;;  %v2748_v23 = vpop.eup %2747 }
 0x40f   : > { %v1815_v31 = vadd.f32 1.0, %v2748_v23 }
 0x410   : > { %2753 = vrcp.f32 %v1802_v19 }
 0x416   : > { %v2750_v24 = vpop.eup %2749 }
 0x417   : > { %v1821_v28 = vmul.f32 %v2750_v24, %v1785_v22  ;;  %v2752_v29 = vpop.eup %2751 }
 0x418   : > { %v1816_v36 = vadd.f32 1.0, %v2752_v29 }
 0x419   : > { %v1823_v32 = vadd.f32 %v1821_v28, %v1637_v25 }
 0x41a   : > { %v2754_v33 = vpop.eup %2753 }
 0x41b   : > { %v1822_v35 = vmul.f32 %v2754_v33, %v1790_v27  ;;  %2755 = vtanh.f32 %v1823_v32 }
 0x41c   : > { %2757 = vrcp.f32 %v1815_v31 }
 0x41d   : > { %v1824_v37 = vadd.f32 %v1822_v35, %v1640_v34 }
 0x41f   : > { %2759 = vtanh.f32 %v1824_v37 }
 0x420   : > { %2761 = vrcp.f32 %v1816_v36 }
 0x425   : > { %v2756_v38 = vpop.eup %2755 }
 0x426   : > { %v1827_v39 = vsub.f32 %v3531_v26, %v2756_v38  ;;  %v2758_v40 = vpop.eup %2757 }
 0x428   : > { %v1829_v41 = vmul.f32 %v2758_v40, %v1827_v39 }
 0x429   : > { %v2760_v42 = vpop.eup %2759 }
 0x42a   : > { %v1828_v43 = vsub.f32 %v3537_v49, %v2760_v42  ;;  %v1831_v45 = vadd.f32 %v2756_v38, %v1829_v41  ;;  %v2762_v46 = vpop.eup %2761 }
 0x42c   : > { %v1830_v47 = vmul.f32 %v2762_v46, %v1828_v43  ;;  %1833 = vst [vmem:[%s635_s1] sm:$0xff] %v1831_v45 }
 0x42e   : > { %v1832_v26 = vadd.f32 %v2760_v42, %v1830_v47 }
 0x430   : > { %1834 = vst [vmem:[%s635_s1 + $0x8] sm:$0xff] %v1832_v26 }
 0x431   : > { %3006 = shalt.err (!%p3003_p0)
}
 0x432   : > { %s3007_s14 = scalar_lea.hbm %s3611_s4, 256  ;;  %s3011_s3 = scalar_lea.hbm %s3758_s18, 512 }
 0x433   : > { %p3008_p12 = scmp.ne.s32.totalorder %s3611_s4, %s3007_s14  ;;  %p3012_p6 = scmp.lt.u32.totalorder %s3611_s4, %s3758_s18 }
 0x434   : > { %p3013_p8 = scmp.lt.u32.totalorder %s3011_s3, %s3007_s14  ;;  %p3015_p2 = scmp.lt.u32.totalorder %s3007_s14, %s3611_s4 }
 0x435   : > { %p3009_p11 = pnand %p3008_p12, %p3759_p9 }
 0x436   : > { %p3014_p7 = por %p3013_p8, %p3012_p6 }
 0x437   : > { %p3010_p13 = pneg %p3009_p11 }
 0x438   : > { %p3016_p3 = por %p3015_p2, %p3014_p7 }
 0x43a   : > { %p3017_p10 = pnand %p3016_p3, %p3010_p13 }
 0x43c   : > { %3020 = shalt.err (!%p3017_p10)
}
 0x43d   : > { %s3092_s28 = smov 128   ;;  %s3093_s8 = smov 8  }
 0x43e   : > { %2654 = dma.vmem_to_hbm [thread:$0]  (%p3759_p9), %s3613_s22, 256, %s3611_s4, %s1836_s9, %s3092_s28, %s3092_s28, %s3093_s8  }
 0x43f PF: > { %s3760_s20 = sld [smem:[#allocation23_spill]]  ;;  %s3761_s21 = sld [smem:[#allocation29_spill]] }
 0x440   : > { %s3762_s1 = sld [smem:[#allocation24_spill]] }
 0x445   : > { %s1864_s23 = sand.u32 1, %s3760_s20   ;;  %p3763_p1 = scmp.ne.s32.totalorder %s3761_s21, 0 }
 0x446   : > { %p3764_p5 = scmp.ge.s32.totalorder %s3762_s1, 2  ;;  %s1865_s7 = scalar_lea.sflag [#allocation4], %s1864_s23 }
 0x448   : > { %p2683_p4 = pnand %p3764_p5, %p3763_p1 }
 0x44a   : > { %3058 = dma.done.wait (!%p2683_p4), %s1865_s7, 256  }
 0x44b   : > { %3060 = vsyncadd (!%p2683_p4), %s1865_s7, 4294967040  ;;  %s3765_s16 = sld [smem:[#allocation26_spill]]  ;;  %s3766_s19 = sld [smem:[#allocation28_spill]] }
 0x44c   : > { %s3767_s29 = smov %s3067_s30  ;;  %s3768_s30 = smov %s3071_s15 }
 0x451   : > { %p33_p0 = scmp.ge.s32.totalorder %s3765_s16, 4   ;;  %s3769_s15 = smov %s3766_s19 }
 0x453   :  { %35 = sbr.rel (!%p33_p0) target bundleno = 21 (0x15), region = 165 }
 0x45a   :  { %1870 = vsyncpa [#allocation3], 1 }
 0x45b   :  { %1872 = vsyncpa [#allocation3 + $0x1], 1 }
 0x45c   :  { %1873 = vsyncpa [#allocation6], 1 }
 0x45d   :  { %1875 = vsyncpa [#allocation6 + $0x1], 1 }
 0x45e   :  { %1876 = vsyncpa [#allocation9], 1 }
 0x45f   :  { %1877 = vsyncpa [#allocation12], 1 }
 0x460   :  { %1878 = vsyncpa [#allocation15], 1 }
 0x461   :  { %1879 = vsyncpa [#allocation4], 1 }
 0x462   :  { %1881 = vsyncpa [#allocation4 + $0x1], 1 }

</bundles_post_ra>
